<compile_context>
chip_gen: v5e
topology: v5e:2x2
jax: 0.10.0
libtpu: 0.0.40
codegen_flags: <defaults>
</compile_context>

<pallas_src>
import jax
import jax.numpy as jnp
from jax.experimental import pallas as pl
from jax.experimental.pallas import tpu as pltpu


# ----------------------------- Pallas kernels -----------------------------

def _im2col_conv_bn_relu(x0_ref, x1_ref, x2_ref, w_ref, scale_ref, bias_ref):
    """Shared body: 3x3x3 'same' conv on one (n, d) tile + folded BN + ReLU.

    x{kd}_ref: (1, 1, Hp, Wp, Ci) bf16  padded activation, D-shifted by kd
    w_ref:     (27*Ci, Co) bf16         taps ordered (kd, kh, kw) major, ci minor
    scale/bias:(1, Co) f32              folded BatchNorm
    Returns the (H*W, Co) f32 post-ReLU activation for this tile.
    """
    _, _, Hp, Wp, Ci = x0_ref.shape
    H, W = Hp - 2, Wp - 2
    slabs = (x0_ref[...].reshape(Hp, Wp, Ci),
             x1_ref[...].reshape(Hp, Wp, Ci),
             x2_ref[...].reshape(Hp, Wp, Ci))
    # im2col slab: one contiguous (H*W, 27*Ci) block -> ONE fat MXU dot
    # (instead of 27 separate K=Ci dots at <5% MXU utilization).
    cols = []
    for kd in range(3):
        s = slabs[kd]
        for kh in range(3):
            for kw in range(3):
                cols.append(s[kh:kh + H, kw:kw + W, :])
    col = jnp.concatenate(cols, axis=-1).reshape(H * W, 27 * Ci)
    acc = jnp.dot(col, w_ref[...], preferred_element_type=jnp.float32)
    y = acc * scale_ref[...] + bias_ref[...]
    return jnp.maximum(y, 0.0)                                    # (H*W, Co) f32


def _conv_bn_relu_kernel(x0_ref, x1_ref, x2_ref, w_ref, scale_ref, bias_ref, o_ref):
    y = _im2col_conv_bn_relu(x0_ref, x1_ref, x2_ref, w_ref, scale_ref, bias_ref)
    o_ref[...] = y.reshape(o_ref.shape).astype(o_ref.dtype)


def _conv_bn_relu_sum_kernel(x0_ref, x1_ref, x2_ref, w_ref, scale_ref, bias_ref,
                             o_ref, sums_ref):
    """Same conv, plus per-tile channel sums (feeds channel-SE pooling), so h2 is
    not re-read from HBM just to average it."""
    y = _im2col_conv_bn_relu(x0_ref, x1_ref, x2_ref, w_ref, scale_ref, bias_ref)
    o_ref[...] = y.reshape(o_ref.shape).astype(o_ref.dtype)
    sums_ref[...] = jnp.sum(y, axis=0, keepdims=True).reshape(sums_ref.shape)


def _gates_reduce_fuse_kernel(x2_ref, xu_ref, g2_ref,
                              wr_ref, sr_ref, br_ref,
                              wsse_ref, bsse_ref,
                              o_ref):
    """Per-(n, d) tile: reduce branch (1x1x1 conv + BN) + spatial-SE gate +
    channel-SE gate (precomputed, broadcast) + final ReLU.

    x2_ref: (1, 1, H, W, Co) bf16   conv2 output tile
    xu_ref: (1, 1, H, W, Ci) bf16   upsampled / concatenated input tile
    g2_ref: (1, 1, Co)       f32    channel-SE gate for this batch element
    """
    _, _, H, W, Co = x2_ref.shape
    Ci = xu_ref.shape[-1]
    x2 = x2_ref[...].reshape(H * W, Co).astype(jnp.float32)
    xu = xu_ref[...].reshape(H * W, Ci)                     # stays bf16 for the MXU

    # reduce branch: 1x1x1 conv + folded BN
    r = jnp.dot(xu, wr_ref[...], preferred_element_type=jnp.float32)
    r = r * sr_ref[...] + br_ref[...]                       # (H*W, Co)

    # spatial SE: per-channel weight + channel reduction on VPU/XLU (no 1-col MXU dot)
    g1 = jax.nn.sigmoid(jnp.sum(x2 * wsse_ref[...], axis=-1, keepdims=True)
                        + bsse_ref[...])                    # (H*W, 1)

    # channel SE: tiny per-batch gate, broadcast in-tile (no (S,N) matmul)
    g2 = g2_ref[...].reshape(1, Co)                         # (1, Co)

    y = (g1 + g2) * x2 + r                                  # g1*x + g2*x + r
    o_ref[...] = jnp.maximum(y, 0.0).reshape(o_ref.shape).astype(o_ref.dtype)


# ----------------------------- wrappers -----------------------------

_COMPILER_PARAMS = pltpu.CompilerParams(
    dimension_semantics=("parallel", "parallel"),   # v7x: split the grid over 2 TCs
    vmem_limit_bytes=48 * 1024 * 1024)              # sized against v7x's 64 MiB VMEM


def conv3x3x3_bn_relu(x, w, scale, bias, *, with_channel_sums=False,
                      out_dtype=jnp.bfloat16):
    """x: (N, D, H, W, Ci) channels-last; w: (27*Ci, Co) bf16.

    Grid-tiled over (N, D): each step DMAs three D-shifted (Hp, Wp, Ci) slabs
    (carrying the 1-voxel halo) and streams one output slab back, double-buffered
    by the Pallas pipeline.
    """
    N, D, H, W, Ci = x.shape
    Co = w.shape[-1]
    # TODO(synk): host-side pad = one extra activation HBM round trip; could be
    # folded into the slab DMA with pl.ANY + manual make_async_copy.
    xp = jnp.pad(x.astype(jnp.bfloat16), ((0, 0), (1, 1), (1, 1), (1, 1), (0, 0)))
    Hp, Wp = H + 2, W + 2

    def shifted_spec(kd):
        return pl.BlockSpec((1, 1, Hp, Wp, Ci),
                            lambda n, d, kd=kd: (n, d + kd, 0, 0, 0))

    in_specs = [shifted_spec(0), shifted_spec(1), shifted_spec(2),
                pl.BlockSpec(w.shape, lambda n, d: (0, 0)),
                pl.BlockSpec(scale.shape, lambda n, d: (0, 0)),
                pl.BlockSpec(bias.shape, lambda n, d: (0, 0))]
    out_block = pl.BlockSpec((1, 1, H, W, Co), lambda n, d: (n, d, 0, 0, 0))

    if with_channel_sums:
        kernel = _conv_bn_relu_sum_kernel
        out_shape = (jax.ShapeDtypeStruct((N, D, H, W, Co), out_dtype),
                     jax.ShapeDtypeStruct((N, D, 1, Co), jnp.float32))
        out_specs = (out_block,
                     pl.BlockSpec((1, 1, 1, Co), lambda n, d: (n, d, 0, 0)))
    else:
        kernel = _conv_bn_relu_kernel
        out_shape = jax.ShapeDtypeStruct((N, D, H, W, Co), out_dtype)
        out_specs = out_block

    return pl.pallas_call(
        kernel,
        grid=(N, D),
        in_specs=in_specs,
        out_specs=out_specs,
        out_shape=out_shape,
        compiler_params=_COMPILER_PARAMS,
    )(xp, xp, xp, w, scale, bias)


def gates_reduce_fuse(h2, x_up, g2, wr, sr, br, wsse, bsse):
    """Streaming gating / reduce / ReLU epilogue over the same (N, D) grid."""
    N, D, H, W, Co = h2.shape
    Ci = x_up.shape[-1]
    g2r = g2.reshape(N, 1, Co).astype(jnp.float32)
    return pl.pallas_call(
        _gates_reduce_fuse_kernel,
        grid=(N, D),
        in_specs=[
            pl.BlockSpec((1, 1, H, W, Co), lambda n, d: (n, d, 0, 0, 0)),
            pl.BlockSpec((1, 1, H, W, Ci), lambda n, d: (n, d, 0, 0, 0)),
            pl.BlockSpec((1, 1, Co), lambda n, d: (n, 0, 0)),
            pl.BlockSpec(wr.shape, lambda n, d: (0, 0)),
            pl.BlockSpec(sr.shape, lambda n, d: (0, 0)),
            pl.BlockSpec(br.shape, lambda n, d: (0, 0)),
            pl.BlockSpec(wsse.shape, lambda n, d: (0, 0)),
            pl.BlockSpec(bsse.shape, lambda n, d: (0, 0)),
        ],
        out_specs=pl.BlockSpec((1, 1, H, W, Co), lambda n, d: (n, d, 0, 0, 0)),
        out_shape=jax.ShapeDtypeStruct((N, D, H, W, Co), jnp.float32),
        compiler_params=_COMPILER_PARAMS,
    )(h2, x_up.astype(jnp.bfloat16), g2r, wr, sr, br, wsse, bsse)


# ----------------------------- glue (host-side JAX) -----------------------------

def _interp_matrix_align_corners(n_in, n_out):
    """1-D linear interpolation matrix (out, in) matching align_corners=True."""
    if n_in == 1:
        return jnp.ones((n_out, 1), jnp.float32)
    if n_out == 1:
        # align_corners=True with a single output sample selects input index 0
        return jnp.zeros((1, n_in), jnp.float32).at[0, 0].set(1.0)
    pos = jnp.arange(n_out, dtype=jnp.float32) * (n_in - 1) / (n_out - 1)
    lo = jnp.clip(jnp.floor(pos).astype(jnp.int32), 0, n_in - 2)
    frac = pos - lo.astype(jnp.float32)
    rows = jnp.arange(n_out)
    M = jnp.zeros((n_out, n_in), jnp.float32)
    M = M.at[rows, lo].add(1.0 - frac)
    M = M.at[rows, lo + 1].add(frac)
    return M


def _trilinear_resize(x, out_dhw):
    """x: (N, D, H, W, C); trilinear, align_corners=True (small host-side matmuls)."""
    Md = _interp_matrix_align_corners(x.shape[1], out_dhw[0])
    Mh = _interp_matrix_align_corners(x.shape[2], out_dhw[1])
    Mw = _interp_matrix_align_corners(x.shape[3], out_dhw[2])
    x = jnp.einsum('od,ndhwc->nohwc', Md, x)
    x = jnp.einsum('oh,ndhwc->ndowc', Mh, x)
    x = jnp.einsum('ow,ndhwc->ndhoc', Mw, x)
    return x


def init_decoder2_params(key, in_channels, channels, out_channels):
    cred = max(out_channels // 2, 1)
    nk = iter(jax.random.split(key, 24))

    def conv_w(ci, co, taps):
        fan_in = taps * ci
        w = jax.random.normal(next(nk), (taps, ci, co), jnp.float32) / jnp.sqrt(float(fan_in))
        return w.reshape(taps * ci, co)

    def bn_fold(c):
        gamma = 1.0 + 0.1 * jax.random.normal(next(nk), (1, c), jnp.float32)
        beta = 0.1 * jax.random.normal(next(nk), (1, c), jnp.float32)
        mean = 0.1 * jax.random.normal(next(nk), (1, c), jnp.float32)
        var = jnp.abs(jax.random.normal(next(nk), (1, c), jnp.float32)) + 1.0
        scale = gamma / jnp.sqrt(var + 1e-5)
        bias = beta - mean * scale
        return scale, bias

    p = {}
    p['w1'] = conv_w(in_channels, channels, 27).astype(jnp.bfloat16)
    p['s1'], p['b1'] = bn_fold(channels)
    p['w2'] = conv_w(channels, out_channels, 27).astype(jnp.bfloat16)
    p['s2'], p['b2'] = bn_fold(out_channels)
    p['wr'] = conv_w(in_channels, out_channels, 1).astype(jnp.bfloat16)
    p['sr'], p['br'] = bn_fold(out_channels)
    p['wsse'] = conv_w(out_channels, 1, 1).reshape(1, out_channels)   # f32, used on VPU
    p['bsse'] = 0.1 * jax.random.normal(next(nk), (1, 1), jnp.float32)
    p['wfc1'] = conv_w(out_channels, cred, 1)
    p['bfc1'] = 0.1 * jax.random.normal(next(nk), (1, cred), jnp.float32)
    p['wfc2'] = conv_w(cred, out_channels, 1)
    p['bfc2'] = 0.1 * jax.random.normal(next(nk), (1, out_channels), jnp.float32)
    return p


def decoder2_forward(params, x, e=None):
    """x (and optional skip e) in PyTorch NCDHW. Returns NCDHW float32."""
    x = jnp.transpose(x, (0, 2, 3, 4, 1)).astype(jnp.float32)          # -> NDHWC
    if e is not None:
        e = jnp.transpose(e, (0, 2, 3, 4, 1)).astype(jnp.float32)
        x = _trilinear_resize(x, e.shape[1:4])
        x = jnp.concatenate([e, x], axis=-1)
    else:
        x = _trilinear_resize(x, (2 * x.shape[1], 2 * x.shape[2], 2 * x.shape[3]))

    N, D, H, W, _ = x.shape

    h1 = conv3x3x3_bn_relu(x, params['w1'], params['s1'], params['b1'])
    h2, ch_sums = conv3x3x3_bn_relu(h1, params['w2'], params['s2'], params['b2'],
                                    with_channel_sums=True)
    Cout = h2.shape[-1]

    # channel SE: tiny (N, Cout) MLP in plain JAX on the in-kernel partial sums
    pooled = ch_sums.reshape(N, D, Cout).sum(axis=1) / float(D * H * W)
    z = jnp.maximum(pooled @ params['wfc1'] + params['bfc1'], 0.0)
    g2 = jax.nn.sigmoid(z @ params['wfc2'] + params['bfc2'])           # (N, Cout)

    out = gates_reduce_fuse(h2, x, g2,
                            params['wr'], params['sr'], params['br'],
                            params['wsse'], params['bsse'])
    return jnp.transpose(out, (0, 4, 1, 2, 3))                          # -> NCDHW


if __name__ == "__main__":
    key = jax.random.PRNGKey(0)
    kp, kx, ke = jax.random.split(key, 3)

    in_channels, channels, out_channels = 4, 8, 8
    params = init_decoder2_params(kp, in_channels, channels, out_channels)

    # e=None path: x (N=2, C=4, D=H=W=4) -> x2 trilinear upsample -> output (2, 8, 8, 8, 8)
    x = jax.random.normal(kx, (2, in_channels, 4, 4, 4), jnp.float32)
    y = decoder2_forward(params, x, e=None)
    jax.block_until_ready(y)
    assert y.shape == (2, out_channels, 8, 8, 8)
    assert bool(jnp.all(jnp.isfinite(y)))

    # skip-connection path: cat([e, interp(x)], 1) has in_channels total channels
    x_lo = jax.random.normal(kx, (2, 2, 4, 4, 4), jnp.float32)
    e = jax.random.normal(ke, (2, 2, 8, 8, 8), jnp.float32)
    y2 = decoder2_forward(params, x_lo, e=e)
    jax.block_until_ready(y2)
    assert y2.shape == (2, out_channels, 8, 8, 8)
    assert bool(jnp.all(jnp.isfinite(y2)))

    print("KERNEL_OK")
</pallas_src>

<mosaic_0001>
module attributes {stable_mosaic.version = 11 : i64} {
  func.func @_conv_bn_relu_kernel(%arg0: i32, %arg1: i32, %arg2: memref<1x1x10x10x4xbf16, #tpu.memory_space<vmem>>, %arg3: memref<1x1x10x10x4xbf16, #tpu.memory_space<vmem>>, %arg4: memref<1x1x10x10x4xbf16, #tpu.memory_space<vmem>>, %arg5: memref<108x8xbf16, #tpu.memory_space<vmem>>, %arg6: memref<1x8xf32, #tpu.memory_space<vmem>>, %arg7: memref<1x8xf32, #tpu.memory_space<vmem>>, %arg8: memref<1x1x8x8x8xbf16, #tpu.memory_space<vmem>>) attributes {dimension_semantics = [#tpu.dimension_semantics<parallel>, #tpu.dimension_semantics<parallel>], iteration_bounds = array<i64: 2, 8>, scalar_prefetch = 0 : i64, scratch_operands = 0 : i64, tpu.core_type = #tpu.core_type<tc>, window_params = [{transform_indices = @transform_0, window_bounds = array<i64: 1, 1, 10, 10, 4>}, {transform_indices = @transform_1, window_bounds = array<i64: 1, 1, 10, 10, 4>}, {transform_indices = @transform_2, window_bounds = array<i64: 1, 1, 10, 10, 4>}, {pipeline_mode = #tpu.pipeline_mode<synchronous>, transform_indices = @transform_3, window_bounds = array<i64: 108, 8>}, {pipeline_mode = #tpu.pipeline_mode<synchronous>, transform_indices = @transform_4, window_bounds = array<i64: 1, 8>}, {pipeline_mode = #tpu.pipeline_mode<synchronous>, transform_indices = @transform_5, window_bounds = array<i64: 1, 8>}, {transform_indices = @transform_6, window_bounds = array<i64: 1, 1, 8, 8, 8>}]} {
    %c0 = arith.constant 0 : index
    %c0_0 = arith.constant 0 : index
    %c0_1 = arith.constant 0 : index
    %c0_2 = arith.constant 0 : index
    %c0_3 = arith.constant 0 : index
    %0 = vector.load %arg2[%c0, %c0_0, %c0_1, %c0_2, %c0_3] : memref<1x1x10x10x4xbf16, #tpu.memory_space<vmem>>, vector<1x1x10x10x4xbf16>
    %1 = vector.shape_cast %0 : vector<1x1x10x10x4xbf16> to vector<10x10x4xbf16>
    %c0_4 = arith.constant 0 : index
    %c0_5 = arith.constant 0 : index
    %c0_6 = arith.constant 0 : index
    %c0_7 = arith.constant 0 : index
    %c0_8 = arith.constant 0 : index
    %2 = vector.load %arg3[%c0_4, %c0_5, %c0_6, %c0_7, %c0_8] : memref<1x1x10x10x4xbf16, #tpu.memory_space<vmem>>, vector<1x1x10x10x4xbf16>
    %3 = vector.shape_cast %2 : vector<1x1x10x10x4xbf16> to vector<10x10x4xbf16>
    %c0_9 = arith.constant 0 : index
    %c0_10 = arith.constant 0 : index
    %c0_11 = arith.constant 0 : index
    %c0_12 = arith.constant 0 : index
    %c0_13 = arith.constant 0 : index
    %4 = vector.load %arg4[%c0_9, %c0_10, %c0_11, %c0_12, %c0_13] : memref<1x1x10x10x4xbf16, #tpu.memory_space<vmem>>, vector<1x1x10x10x4xbf16>
    %5 = vector.shape_cast %4 : vector<1x1x10x10x4xbf16> to vector<10x10x4xbf16>
    %6 = vector.extract_strided_slice %1 {offsets = [0, 0, 0], sizes = [8, 8, 4], strides = [1, 1, 1]} : vector<10x10x4xbf16> to vector<8x8x4xbf16>
    %7 = vector.extract_strided_slice %1 {offsets = [0, 1, 0], sizes = [8, 8, 4], strides = [1, 1, 1]} : vector<10x10x4xbf16> to vector<8x8x4xbf16>
    %8 = vector.extract_strided_slice %1 {offsets = [0, 2, 0], sizes = [8, 8, 4], strides = [1, 1, 1]} : vector<10x10x4xbf16> to vector<8x8x4xbf16>
    %9 = vector.extract_strided_slice %1 {offsets = [1, 0, 0], sizes = [8, 8, 4], strides = [1, 1, 1]} : vector<10x10x4xbf16> to vector<8x8x4xbf16>
    %10 = vector.extract_strided_slice %1 {offsets = [1, 1, 0], sizes = [8, 8, 4], strides = [1, 1, 1]} : vector<10x10x4xbf16> to vector<8x8x4xbf16>
    %11 = vector.extract_strided_slice %1 {offsets = [1, 2, 0], sizes = [8, 8, 4], strides = [1, 1, 1]} : vector<10x10x4xbf16> to vector<8x8x4xbf16>
    %12 = vector.extract_strided_slice %1 {offsets = [2, 0, 0], sizes = [8, 8, 4], strides = [1, 1, 1]} : vector<10x10x4xbf16> to vector<8x8x4xbf16>
    %13 = vector.extract_strided_slice %1 {offsets = [2, 1, 0], sizes = [8, 8, 4], strides = [1, 1, 1]} : vector<10x10x4xbf16> to vector<8x8x4xbf16>
    %14 = vector.extract_strided_slice %1 {offsets = [2, 2, 0], sizes = [8, 8, 4], strides = [1, 1, 1]} : vector<10x10x4xbf16> to vector<8x8x4xbf16>
    %15 = vector.extract_strided_slice %3 {offsets = [0, 0, 0], sizes = [8, 8, 4], strides = [1, 1, 1]} : vector<10x10x4xbf16> to vector<8x8x4xbf16>
    %16 = vector.extract_strided_slice %3 {offsets = [0, 1, 0], sizes = [8, 8, 4], strides = [1, 1, 1]} : vector<10x10x4xbf16> to vector<8x8x4xbf16>
    %17 = vector.extract_strided_slice %3 {offsets = [0, 2, 0], sizes = [8, 8, 4], strides = [1, 1, 1]} : vector<10x10x4xbf16> to vector<8x8x4xbf16>
    %18 = vector.extract_strided_slice %3 {offsets = [1, 0, 0], sizes = [8, 8, 4], strides = [1, 1, 1]} : vector<10x10x4xbf16> to vector<8x8x4xbf16>
    %19 = vector.extract_strided_slice %3 {offsets = [1, 1, 0], sizes = [8, 8, 4], strides = [1, 1, 1]} : vector<10x10x4xbf16> to vector<8x8x4xbf16>
    %20 = vector.extract_strided_slice %3 {offsets = [1, 2, 0], sizes = [8, 8, 4], strides = [1, 1, 1]} : vector<10x10x4xbf16> to vector<8x8x4xbf16>
    %21 = vector.extract_strided_slice %3 {offsets = [2, 0, 0], sizes = [8, 8, 4], strides = [1, 1, 1]} : vector<10x10x4xbf16> to vector<8x8x4xbf16>
    %22 = vector.extract_strided_slice %3 {offsets = [2, 1, 0], sizes = [8, 8, 4], strides = [1, 1, 1]} : vector<10x10x4xbf16> to vector<8x8x4xbf16>
    %23 = vector.extract_strided_slice %3 {offsets = [2, 2, 0], sizes = [8, 8, 4], strides = [1, 1, 1]} : vector<10x10x4xbf16> to vector<8x8x4xbf16>
    %24 = vector.extract_strided_slice %5 {offsets = [0, 0, 0], sizes = [8, 8, 4], strides = [1, 1, 1]} : vector<10x10x4xbf16> to vector<8x8x4xbf16>
    %25 = vector.extract_strided_slice %5 {offsets = [0, 1, 0], sizes = [8, 8, 4], strides = [1, 1, 1]} : vector<10x10x4xbf16> to vector<8x8x4xbf16>
    %26 = vector.extract_strided_slice %5 {offsets = [0, 2, 0], sizes = [8, 8, 4], strides = [1, 1, 1]} : vector<10x10x4xbf16> to vector<8x8x4xbf16>
    %27 = vector.extract_strided_slice %5 {offsets = [1, 0, 0], sizes = [8, 8, 4], strides = [1, 1, 1]} : vector<10x10x4xbf16> to vector<8x8x4xbf16>
    %28 = vector.extract_strided_slice %5 {offsets = [1, 1, 0], sizes = [8, 8, 4], strides = [1, 1, 1]} : vector<10x10x4xbf16> to vector<8x8x4xbf16>
    %29 = vector.extract_strided_slice %5 {offsets = [1, 2, 0], sizes = [8, 8, 4], strides = [1, 1, 1]} : vector<10x10x4xbf16> to vector<8x8x4xbf16>
    %30 = vector.extract_strided_slice %5 {offsets = [2, 0, 0], sizes = [8, 8, 4], strides = [1, 1, 1]} : vector<10x10x4xbf16> to vector<8x8x4xbf16>
    %31 = vector.extract_strided_slice %5 {offsets = [2, 1, 0], sizes = [8, 8, 4], strides = [1, 1, 1]} : vector<10x10x4xbf16> to vector<8x8x4xbf16>
    %32 = vector.extract_strided_slice %5 {offsets = [2, 2, 0], sizes = [8, 8, 4], strides = [1, 1, 1]} : vector<10x10x4xbf16> to vector<8x8x4xbf16>
    %33 = tpu.concatenate %6, %7, %8, %9, %10, %11, %12, %13, %14, %15, %16, %17, %18, %19, %20, %21 in 2 : vector<8x8x4xbf16>, vector<8x8x4xbf16>, vector<8x8x4xbf16>, vector<8x8x4xbf16>, vector<8x8x4xbf16>, vector<8x8x4xbf16>, vector<8x8x4xbf16>, vector<8x8x4xbf16>, vector<8x8x4xbf16>, vector<8x8x4xbf16>, vector<8x8x4xbf16>, vector<8x8x4xbf16>, vector<8x8x4xbf16>, vector<8x8x4xbf16>, vector<8x8x4xbf16>, vector<8x8x4xbf16> -> vector<8x8x64xbf16>
    %34 = tpu.concatenate %22, %23, %24, %25, %26, %27, %28, %29, %30, %31, %32 in 2 : vector<8x8x4xbf16>, vector<8x8x4xbf16>, vector<8x8x4xbf16>, vector<8x8x4xbf16>, vector<8x8x4xbf16>, vector<8x8x4xbf16>, vector<8x8x4xbf16>, vector<8x8x4xbf16>, vector<8x8x4xbf16>, vector<8x8x4xbf16>, vector<8x8x4xbf16> -> vector<8x8x44xbf16>
    %35 = tpu.concatenate %33, %34 in 2 : vector<8x8x64xbf16>, vector<8x8x44xbf16> -> vector<8x8x108xbf16>
    %36 = vector.shape_cast %35 : vector<8x8x108xbf16> to vector<64x108xbf16>
    %c0_14 = arith.constant 0 : index
    %c0_15 = arith.constant 0 : index
    %37 = vector.load %arg5[%c0_14, %c0_15] : memref<108x8xbf16, #tpu.memory_space<vmem>>, vector<108x8xbf16>
    %cst = arith.constant dense<0.000000e+00> : vector<64x8xf32>
    %38 = tpu.matmul %36, %37, %cst {dimension_numbers = #tpu.dot_dimension_numbers<[1], [0], [0], [1], [0, 0, 1, 1], [], []>} : vector<64x108xbf16>, vector<108x8xbf16>, vector<64x8xf32> -> vector<64x8xf32>
    %c0_16 = arith.constant 0 : index
    %c0_17 = arith.constant 0 : index
    %39 = vector.load %arg6[%c0_16, %c0_17] : memref<1x8xf32, #tpu.memory_space<vmem>>, vector<1x8xf32>
    %40 = vector.broadcast %39 : vector<1x8xf32> to vector<64x8xf32>
    %41 = arith.mulf %38, %40 : vector<64x8xf32>
    %c0_18 = arith.constant 0 : index
    %c0_19 = arith.constant 0 : index
    %42 = vector.load %arg7[%c0_18, %c0_19] : memref<1x8xf32, #tpu.memory_space<vmem>>, vector<1x8xf32>
    %43 = vector.broadcast %42 : vector<1x8xf32> to vector<64x8xf32>
    %44 = arith.addf %41, %43 : vector<64x8xf32>
    %cst_20 = arith.constant 0.000000e+00 : f32
    %45 = vector.broadcast %cst_20 : f32 to vector<64x8xf32>
    %46 = arith.maximumf %44, %45 : vector<64x8xf32>
    %47 = vector.shape_cast %46 : vector<64x8xf32> to vector<1x1x8x8x8xf32>
    %48 = arith.truncf %47 : vector<1x1x8x8x8xf32> to vector<1x1x8x8x8xbf16>
    %c0_21 = arith.constant 0 : index
    %c0_22 = arith.constant 0 : index
    %c0_23 = arith.constant 0 : index
    %c0_24 = arith.constant 0 : index
    %c0_25 = arith.constant 0 : index
    %49 = vector.load %arg8[%c0_21, %c0_22, %c0_23, %c0_24, %c0_25] : memref<1x1x8x8x8xbf16, #tpu.memory_space<vmem>>, vector<1x1x8x8x8xbf16>
    tpu.vector_store %arg8[%c0_21, %c0_22, %c0_23, %c0_24, %c0_25], %48 {strides = array<i32>} : memref<1x1x8x8x8xbf16, #tpu.memory_space<vmem>>, vector<1x1x8x8x8xbf16>,
    return
  }
  func.func @transform_0(%arg0: i32, %arg1: i32) -> (i32, i32, i32, i32, i32) {
    %c0_i32 = arith.constant 0 : i32
    %0 = arith.addi %arg1, %c0_i32 : i32
    %c0_i32_0 = arith.constant 0 : i32
    %c0_i32_1 = arith.constant 0 : i32
    %c0_i32_2 = arith.constant 0 : i32
    %c0_i32_3 = arith.constant 0 : i32
    return %arg0, %0, %c0_i32_0, %c0_i32_1, %c0_i32_2 : i32, i32, i32, i32, i32
  }
  func.func @transform_1(%arg0: i32, %arg1: i32) -> (i32, i32, i32, i32, i32) {
    %c1_i32 = arith.constant 1 : i32
    %0 = arith.addi %arg1, %c1_i32 : i32
    %c0_i32 = arith.constant 0 : i32
    %c0_i32_0 = arith.constant 0 : i32
    %c0_i32_1 = arith.constant 0 : i32
    %c0_i32_2 = arith.constant 0 : i32
    return %arg0, %0, %c0_i32, %c0_i32_0, %c0_i32_1 : i32, i32, i32, i32, i32
  }
  func.func @transform_2(%arg0: i32, %arg1: i32) -> (i32, i32, i32, i32, i32) {
    %c2_i32 = arith.constant 2 : i32
    %0 = arith.addi %arg1, %c2_i32 : i32
    %c0_i32 = arith.constant 0 : i32
    %c0_i32_0 = arith.constant 0 : i32
    %c0_i32_1 = arith.constant 0 : i32
    %c0_i32_2 = arith.constant 0 : i32
    return %arg0, %0, %c0_i32, %c0_i32_0, %c0_i32_1 : i32, i32, i32, i32, i32
  }
  func.func @transform_3(%arg0: i32, %arg1: i32) -> (i32, i32) {
    %c0_i32 = arith.constant 0 : i32
    %c0_i32_0 = arith.constant 0 : i32
    %c0_i32_1 = arith.constant 0 : i32
    return %c0_i32, %c0_i32_0 : i32, i32
  }
  func.func @transform_4(%arg0: i32, %arg1: i32) -> (i32, i32) {
    %c0_i32 = arith.constant 0 : i32
    %c0_i32_0 = arith.constant 0 : i32
    %c0_i32_1 = arith.constant 0 : i32
    return %c0_i32, %c0_i32_0 : i32, i32
  }
  func.func @transform_5(%arg0: i32, %arg1: i32) -> (i32, i32) {
    %c0_i32 = arith.constant 0 : i32
    %c0_i32_0 = arith.constant 0 : i32
    %c0_i32_1 = arith.constant 0 : i32
    return %c0_i32, %c0_i32_0 : i32, i32
  }
  func.func @transform_6(%arg0: i32, %arg1: i32) -> (i32, i32, i32, i32, i32) {
    %c0_i32 = arith.constant 0 : i32
    %c0_i32_0 = arith.constant 0 : i32
    %c0_i32_1 = arith.constant 0 : i32
    %c0_i32_2 = arith.constant 0 : i32
    return %arg0, %arg1, %c0_i32, %c0_i32_0, %c0_i32_1 : i32, i32, i32, i32, i32
  }
}

</mosaic_0001>

<bundles_post_ra>
// kernel: tpu_custom_call.1
= control target key start
LH: loop header
LB: loop body
LE: loop exit
PB: predicated region body
PF: predicated region fallthrough
CT: control target
= control target key end

     0   :  { %11 = vsyncpa [#allocation3], 0  ;;  %s3896_s0 = inlined_call_operand.vmem [shape: bf16[2,10,10,10,4], index: 0, kind: input, shape index: {}]   ;;  %s3897_s1 = inlined_call_operand.vmem [shape: bf16[2,10,10,10,4], index: 1, kind: input, shape index: {}]   ;;  %s3898_s2 = inlined_call_operand.vmem [shape: bf16[2,10,10,10,4], index: 2, kind: input, shape index: {}]   ;;  %s3899_s3 = inlined_call_operand.vmem [shape: bf16[108,8], index: 3, kind: input, shape index: {}]   ;;  %s3900_s4 = inlined_call_operand.vmem [shape: f32[1,8], index: 4, kind: input, shape index: {}]   ;;  %s3901_s5 = inlined_call_operand.vmem [shape: f32[1,8], index: 5, kind: input, shape index: {}]   ;;  %s3902_s6 = inlined_call_operand.hbm [shape: bf16[2,8,8,8,8], index: 6, kind: output, shape index: {}]  }
   0x1   :  { %13 = vsyncpa [#allocation3 + $0x1], 0  ;;  %s2438_s21 = smov 0   ;;  %s2440_s22 = smov 0  }
   0x2   :  { %s2442_s23 = smov 0   ;;  %s2444_s24 = smov 0  }
   0x3   :  { %s2446_s25 = smov 0   ;;  %s2448_s26 = smov 0  }
   0x4   :  { %s2450_s27 = smov 0   ;;  %s2452_s28 = smov 0  }
   0x5 LB: > { %s2118_s29 = sadd.s32 4294967295, %s2385_s28   ;;  %s2119_s30 = sadd.s32 4294967294, %s2385_s28   ;;  %s2385_s28 = sphi %s2452_s28, %s19_s28   ;;  %s2381_s27 = sphi %s2450_s27, %s4022_s27   ;;  %s2377_s26 = sphi %s2448_s26, %s4021_s26   ;;  %s2373_s25 = sphi %s2446_s25, %s4020_s25   ;;  %s2369_s24 = sphi %s2444_s24, %s4019_s24   ;;  %s2365_s23 = sphi %s2442_s23, %s4018_s23   ;;  %s2361_s22 = sphi %s2440_s22, %s4017_s22   ;;  %s2357_s21 = sphi %s2438_s21, %s4016_s21  }
   0x6   : > { %s28_s7 = sadd.s32 1, %s2377_s26  ;;  %s31_s8 = sadd.s32 1, %s2381_s27 }
   0x7   : > { %p29_p0 = scmp.ge.s32.totalorder %s28_s7, 8  ;;  %p201_p1 = scmp.ne.s32.totalorder %s2365_s23, %s2361_s22 }
   0x8   : > { %p202_p2 = scmp.eq.s32.totalorder %s2118_s29, 15  ;;  %p207_p5 = scmp.ne.s32.totalorder %s2361_s22, %s2357_s21 }
   0x9   : > { %s4024_s7 = smov (%p29_p0, %s28_s7), 0  ;;  %s4026_s8 = smov (!%p29_p0, %s31_s8), %s2381_s27 }
   0xa   : > { %s187_s9 = ssub.s32 %s2377_s26, %s4024_s7  ;;  %p2489_p3 = por %p202_p2, %p201_p1 }
   0xb   : > { %p33_p4 = scmp.ge.s32.totalorder %s4026_s8, 2  ;;  %p208_p6 = scmp.eq.s32.totalorder %s2119_s30, 15 }
   0xc   : > { %p2122_p7 = scmp.ge.s32.totalorder %s2385_s28, 1  ;;  %p275_p9 = scmp.lt.s32.totalorder %s2385_s28, 17 }
   0xd   : > { %s4028_s8 = smov (%p33_p4, %s4026_s8), 0  ;;  %p2498_p8 = por %p208_p6, %p207_p5 }
   0xe   : > { %s186_s12 = ssub.s32 %s2381_s27, %s4028_s8  ;;  %s191_s13 = sadd.s32 1, %s2365_s23 }
   0xf   : > { %s188_s14 = sor.u32 %s187_s9, %s186_s12  ;;  %p276_p10 = pnand %p2122_p7, %p275_p9 }
  0x10   : > { %p189_p11 = scmp.eq.s32.totalorder %s188_s14, 0 }
  0x11   : > { %279 = sbr.rel (%p276_p10) target bundleno = 960 (0x3c0), region = 44 }
  0x12   : > { %s2507_s15 = scalar_select %p189_p11, %s2365_s23, %s191_s13  }
  0x16   : > { %p329_p12 = scmp.lt.s32.totalorder %s2373_s25, 1  ;;  %p331_p13 = scmp.lt.s32.totalorder %s2369_s24, 9  ;;  %vm929_vm0 = vcmask 31744   ;;  %vm954_vm1 = vcmask 64512   ;;  %vm971_vm2 = vcmask 97280   ;;  %vm988_vm3 = vcmask 130048  }
  0x17   : > { %s3911_s13 = smov 8   ;;  %s2388_s14 = smov 4   ;;  %vm1005_vm4 = vcmask 162816   ;;  %vm1022_vm5 = vcmask 195584   ;;  %vm1039_vm6 = vcmask 228352   ;;  %vm1056_vm7 = vcmask 261120  }
  0x18   : > { %s330_s16 = scalar_select %p329_p12, %s2373_s25, 1  ;;  %vm1073_vm8 = vcmask 293888   ;;  %vm1090_vm9 = vcmask 326656   ;;  %vm1107_vm10 = vcmask 359424   ;;  %vm1124_vm11 = vcmask 392192  }
  0x19   : > { %s332_s17 = scalar_select %p331_p13, %s2369_s24, 9  ;;  %vm1141_vm12 = vcmask 424960   ;;  %vm1158_vm13 = vcmask 457728   ;;  %vm1175_vm14 = vcmask 490496   ;;  %vm1891_vm15 = vcmask 1045504  }
  0x1a   : > { %s2513_s18 = smul.u32 200, %s330_s16  ;;  %s3909_s16 = smov 12  }
  0x1b   : > { %s2198_s19 = smul.u32 20, %s332_s17  ;;  %s3907_s17 = smov 16  }
  0x1c   : > { %s338_s30 = sadd.s32 1, %s2369_s24  ;;  %s2394_s9 = smov 32  }
  0x1d   : > { %s335_s20 = sadd.s32 %s2513_s18, %s2198_s19  ;;  %s3905_s19 = smov 20  }
  0x1e   : > { %s2124_s29 = sshll.u32 %s335_s20, 2  ;;  %s3903_s20 = smov 24  }
  0x1f   : > { %s2519_s12 = scalar_lea.vmem %s3896_s0, %s2124_s29  ;;  %s2393_s29 = smov 28  }
  0x20   : > { %v2129_v0 = vld [vmem:[%s2519_s12] sm:$0xf]  ;;  %v2169_v1 = vld [vmem:[%s2519_s12] sm:$0x10]  ;;  %v2524_v2 = vld [vmem:[%s2519_s12 + $0x10] sm:$0xf] }
  0x21   : > { %v2130_v3 = vor.u32 %v2169_v1, %v2129_v0  ;;  %v366_v4 = vld [vmem:[%s2519_s12 + $0x14] sm:$0x1]  ;;  %v2528_v5 = vunpack.c.l.b16 %v2524_v2  ;;  %v2531_v6 = vld [vmem:[%s2519_s12 + $0x20] sm:$0xf]  ;;  %v370_v7 = vld [vmem:[%s2519_s12 + $0x24] sm:$0x1] }
  0x22   : > { %3933 = vst [vmem:[#allocation5_spill] sm:$0xff] %v2531_v6  ;;  %v442_v8 = vunpack.c.l.b16 %v366_v4  ;;  %v2535_v9 = vunpack.c.l.b16 %v2531_v6  ;;  %v446_v10 = vunpack.c.l.b16 %v370_v7  ;;  %v2538_v11 = vld [vmem:[%s2519_s12 + $0x8] sm:$0xf]  ;;  %v364_v12 = vld [vmem:[%s2519_s12 + $0xc] sm:$0x1]  ;;  %p341_p0 = scmp.lt.s32.totalorder %s338_s30, 9 }
  0x23   : > { %v2542_v13 = vld [vmem:[%s2519_s12 + $0x18] sm:$0xf]  ;;  %v533_v14 = vrot.slane %v2130_v3, 1  ;;  %v462_v15 = vshrl.u32 %v2130_v3, 16  ;;  %v464_v16 = vshll.u32 %v2130_v3, 16  ;;  %v2545_v17 = vunpack.c.l.b16 %v2538_v11 }
  0x24   : > { %3934 = vst [vmem:[#allocation6_spill] sm:$0xff] %v2542_v13  ;;  %v368_v18 = vld [vmem:[%s2519_s12 + $0x1c] sm:$0x1]  ;;  %v2549_v19 = vpack.c.b16 %v442_v8, %v2528_v5  ;;  %v2552_v20 = vpack.c.b16 %v446_v10, %v2535_v9  ;;  %v440_v21 = vunpack.c.l.b16 %v364_v12  ;;  %v2555_v22 = vunpack.c.l.b16 %v2542_v13  ;;  %v2558_v23 = vld [vmem:[%s2519_s12 + $0x28] sm:$0xf]  ;;  %s4030_s30 = smov (!%p341_p0, %s338_s30), 9 }
  0x25   : > { %v372_v24 = vld [vmem:[%s2519_s12 + $0x2c] sm:$0x1]  ;;  %541 = vrot.lane.b32.xlu2 %v533_v14, %s3911_s13  ;;  %v466_v25 = vrot.slane %v464_v16, 1  ;;  %v444_v26 = vunpack.c.l.b16 %v368_v18  ;;  %v2563_v27 = vunpack.c.l.b16 %v2558_v23  ;;  %v2566_v29 = vld [vmem:[%s2519_s12 + $0x30] sm:$0xf] }
  0x26   : > { %v448_v28 = vunpack.c.l.b16 %v372_v24  ;;  %v374_v30 = vld [vmem:[%s2519_s12 + $0x34] sm:$0x1]  ;;  %v476_v31 = vshrl.u32 %v2549_v19, 16  ;;  %v478_v32 = vshll.u32 %v2549_v19, 16  ;;  %v490_v33 = vshrl.u32 %v2552_v20, 16 }
  0x27   : > { %v492_v34 = vshll.u32 %v2552_v20, 16  ;;  %v467_v35 = vor.u32 %v466_v25, %v462_v15  ;;  %v2574_v36 = vpack.c.b16 %v440_v21, %v2545_v17  ;;  %v456_v37 = vpack.c.b16 %v444_v26, %v2555_v22  ;;  %v2582_v43 = vld [vmem:[%s2519_s12 + $0x38] sm:$0xf]  ;;  %v376_v47 = vld [vmem:[%s2519_s12 + $0x3c] sm:$0x1] }
  0x28   : > { %v458_v38 = vpack.c.b16 %v448_v28, %v2563_v27  ;;  %v480_v39 = vrot.slane %v478_v32, 1  ;;  %v2579_v41 = vunpack.c.l.b16 %v2566_v29  ;;  %v450_v42 = vunpack.c.l.b16 %v374_v30  ;;  %v377_v26 = vld [vmem:[%s2519_s12 + $0x40] sm:$0xf] }
  0x29   : > { %v494_v40 = vrot.slane %v492_v34, 1  ;;  %517 = vrot.lane.b32.xlu0 %v467_v35, %s2388_s14  ;;  %v469_v44 = vshrl.u32 %v2574_v36, 16  ;;  %v471_v45 = vshll.u32 %v2574_v36, 16  ;;  %v485_v46 = vshll.u32 %v456_v37, 16 }
  0x2a   : > { %v2588_v48 = vor.u32 %v480_v39, %v476_v31  ;;  %v499_v50 = vshll.u32 %v458_v38, 16  ;;  %v459_v52 = vpack.c.b16 %v450_v42, %v2579_v41  ;;  %v451_v53 = vunpack.c.l.b16 %v2582_v43 }
  0x2b   : > { %v2590_v49 = vor.u32 %v494_v40, %v490_v33  ;;  %v473_v51 = vrot.slane %v471_v45, 1  ;;  %v483_v54 = vshrl.u32 %v456_v37, 16  ;;  %v487_v55 = vrot.slane %v485_v46, 1 }
  0x2c   : > { %521 = vrot.lane.b32.xlu1 %v2588_v48, %s2388_s14  ;;  %v452_v56 = vunpack.c.l.b16 %v376_v47  ;;  %v497_v58 = vshrl.u32 %v458_v38, 16  ;;  %v501_v59 = vrot.slane %v499_v50, 1  ;;  %v506_v60 = vshll.u32 %v459_v52, 16 }
  0x2d   : > { %525 = vrot.lane.b32.xlu2 %v2590_v49, %s2388_s14  ;;  %v474_v57 = vor.u32 %v473_v51, %v469_v44  ;;  %v2598_v62 = vor.u32 %v487_v55, %v483_v54  ;;  %v504_v1 = vshrl.u32 %v459_v52, 16  ;;  %v2613_v12 = vrot.slane %v456_v37, 1 }
  0x2e   : > { %v460_v61 = vpack.c.b16 %v452_v56, %v451_v53  ;;  %v2601_v0 = vor.u32 %v501_v59, %v497_v58  ;;  %v508_v3 = vrot.slane %v506_v60, 1  ;;  %v534_v14 = vrot.slane %v2574_v36, 1 }
  0x2f   : > { %v2621_v15 = vrot.slane %v2549_v19, 1  ;;  %v2624_v16 = vrot.slane %v459_v52, 1  ;;  %v2631_v18 = vrot.slane %v2552_v20, 1  ;;  %v2633_v21 = vrot.slane %v458_v38, 1  ;;  %v380_v52 = vld [vmem:[%s2519_s12 + $0x4c] sm:$0x1] }
  0x30   : > { %v513_v63 = vshll.u32 %v460_v61, 16  ;;  %v511_v4 = vshrl.u32 %v460_v61, 16  ;;  %v2607_v8 = vor.u32 %v508_v3, %v504_v1  ;;  %v560_v19 = vpack.c.b16 %v2528_v5, %v2528_v5 }
  0x31   : > { %519 = vrot.lane.b32.xlu0 %v474_v57, %s2388_s14  ;;  %v2642_v24 = vrot.slane %v460_v61, 1  ;;  %v559_v20 = vpack.c.b16 %v2545_v17, %v2545_v17  ;;  %v563_v25 = vpack.c.b16 %v2563_v27, %v2563_v27  ;;  %v561_v5 = vpack.c.b16 %v2555_v22, %v2555_v22  ;;  %v378_v22 = vld [vmem:[%s2519_s12 + $0x44] sm:$0x1] }
  0x32   : > { %v515_v7 = vrot.slane %v513_v63, 1  ;;  %v558_v28 = vunpack.c.l.b16 %v377_v26  ;;  %v562_v30 = vpack.c.b16 %v2535_v9, %v2535_v9  ;;  %v564_v27 = vpack.c.b16 %v2579_v41, %v2579_v41  ;;  %v379_v41 = vld [vmem:[%s2519_s12 + $0x48] sm:$0xf] }
  0x33   : > { %v565_v31 = vpack.c.b16 %v451_v53, %v451_v53  ;;  %v584_v9 = vunpack.c.l.b16 %v378_v22  ;;  %v627_v42 = vunpack.c.l.b16 %v379_v41  ;;  %v646_v55 = vunpack.c.l.b16 %v380_v52 }
  0x34   : > { %523 = vrot.lane.b32.xlu1 %v2598_v62, %s2388_s14  ;;  %v2609_v10 = vor.u32 %v515_v7, %v511_v4  ;;  %v566_v17 = vpack.c.b16 %v558_v28, %v558_v28 }
  0x35   : > { %527 = vrot.lane.b32.xlu2 %v2601_v0, %s2388_s14  ;;  %v2668_v32 = vpack.c.b16 %v584_v9, %v558_v28  ;;  %v628_v45 = vpack.c.b16 %v627_v42, %v627_v42 }
  0x37   : > { %v589_v33 = vshll.u32 %v2668_v32, 16  ;;  %v587_v34 = vshrl.u32 %v2668_v32, 16  ;;  %v609_v39 = vrot.slane %v2668_v32, 1 }
  0x39   : > { %529 = vrot.lane.b32.xlu0 %v2607_v8, %s2388_s14  ;;  %v591_v35 = vrot.slane %v589_v33, 1 }
  0x3b   : > { %v592_v36 = vor.u32 %v591_v35, %v587_v34 }
  0x3c   : > { %531 = vrot.lane.b32.xlu1 %v2609_v10, %s2388_s14 }
  0x3d   : > { %547 = vrot.lane.b32.xlu2 %v2613_v12, %s3911_s13 }
  0x41   : > { %543 = vrot.lane.b32.xlu0 %v534_v14, %s3911_s13 }
  0x44   : > { %545 = vrot.lane.b32.xlu1 %v2621_v15, %s3911_s13 }
  0x45   : > { %553 = vrot.lane.b32.xlu2 %v2624_v16, %s3911_s13 }
  0x49   : > { %549 = vrot.lane.b32.xlu0 %v2631_v18, %s3911_s13 }
  0x4c   : > { %551 = vrot.lane.b32.xlu1 %v2633_v21, %s3911_s13 }
  0x4d   : > { %569 = vrot.lane.b32.xlu2 %v560_v19, %s3909_s16 }
  0x51   : > { %555 = vrot.lane.b32.xlu0 %v2642_v24, %s3911_s13 }
  0x54   : > { %567 = vrot.lane.b32.xlu1 %v559_v20, %s3909_s16 }
  0x55   : > { %575 = vrot.lane.b32.xlu2 %v563_v25, %s3909_s16 }
  0x59   : > { %571 = vrot.lane.b32.xlu0 %v561_v5, %s3909_s16 }
  0x5c   : > { %573 = vrot.lane.b32.xlu1 %v562_v30, %s3909_s16 }
  0x5d   : > { %581 = vrot.lane.b32.xlu2 %v566_v17, %s3909_s16 }
  0x61   : > { %577 = vrot.lane.b32.xlu0 %v564_v27, %s3909_s16 }
  0x64   : > { %579 = vrot.lane.b32.xlu1 %v565_v31, %s3909_s16  ;;  %s2395_s16 = smov 36  }
  0x65   : > { %597 = vrot.lane.b32.xlu2 %v2598_v62, %s3907_s17 }
  0x69   : > { %593 = vrot.lane.b32.xlu0 %v474_v57, %s3907_s17  ;;  %v647_v57 = vpack.c.b16 %v646_v55, %v627_v42 }
  0x6b   : > { %v651_v59 = vshll.u32 %v647_v57, 16  ;;  %v649_v60 = vshrl.u32 %v647_v57, 16 }
  0x6c   : > { %595 = vrot.lane.b32.xlu1 %v2588_v48, %s3907_s17 }
  0x6d   : > { %603 = vrot.lane.b32.xlu2 %v2607_v8, %s3907_s17  ;;  %v653_v61 = vrot.slane %v651_v59, 1 }
  0x6f   : > { %v654_v1 = vor.u32 %v653_v61, %v649_v60 }
  0x71   : > { %599 = vrot.lane.b32.xlu0 %v2590_v49, %s3907_s17 }
  0x74   : > { %601 = vrot.lane.b32.xlu1 %v2601_v0, %s3907_s17 }
  0x75   : > { %610 = vrot.lane.b32.xlu2 %v534_v14, %s3905_s19 }
  0x79   : > { %605 = vrot.lane.b32.xlu0 %v2609_v10, %s3907_s17 }
  0x7c   : > { %607 = vrot.lane.b32.xlu1 %v592_v36, %s3907_s17 }
  0x7d   : > { %616 = vrot.lane.b32.xlu2 %v2631_v18, %s3905_s19 }
  0x7f   : > { %v2686_v37 = vpop.permute.xlu2 %541 }
  0x81   : > { %612 = vrot.lane.b32.xlu0 %v2621_v15, %s3905_s19 }
  0x84   : > { %614 = vrot.lane.b32.xlu1 %v2613_v12, %s3905_s19 }
  0x85   : > { %622 = vrot.lane.b32.xlu2 %v2642_v24, %s3905_s19 }
  0x87   : > { %v2694_v38 = vpop.permute.xlu2 %525 }
  0x88   : > { %3935 = vst [vmem:[#allocation7_spill] sm:$0xff] %v2694_v38 }
  0x89   : > { %618 = vrot.lane.b32.xlu0 %v2633_v21, %s3905_s19 }
  0x8c   : > { %620 = vrot.lane.b32.xlu1 %v2624_v16, %s3905_s19 }
  0x8d   : > { %631 = vrot.lane.b32.xlu2 %v561_v5, %s3903_s20 }
  0x8f   : > { %v2702_v40 = vpop.permute.xlu2 %527 }
  0x91   : > { %624 = vrot.lane.b32.xlu0 %v609_v39, %s3905_s19 }
  0x94   : > { %629 = vrot.lane.b32.xlu1 %v560_v19, %s3903_s20 }
  0x95   : > { %637 = vrot.lane.b32.xlu2 %v564_v27, %s3903_s20 }
  0x97   : > { %v2708_v44 = vpop.permute.xlu2 %547 }
  0x98   : > { %3936 = vst [vmem:[#allocation8_spill] sm:$0xff] %v2708_v44 }
  0x99   : > { %633 = vrot.lane.b32.xlu0 %v562_v30, %s3903_s20 }
  0x9b   : > { %v2711_v46 = vpop.permute.xlu0 %517 }
  0x9c   : > { %635 = vrot.lane.b32.xlu1 %v563_v25, %s3903_s20  ;;  %v671_v25 = vrot.slane %v647_v57, 1 }
  0x9d   : > { %643 = vrot.lane.b32.xlu2 %v628_v45, %s3903_s20 }
  0x9e   : > { %v2715_v47 = vpop.permute.xlu1 %521 }
  0x9f   : > { %v2717_v50 = vpop.permute.xlu2 %553 }
  0xa1   : > { %639 = vrot.lane.b32.xlu0 %v565_v31, %s3903_s20 }
  0xa3   : > { %v2720_v51 = vpop.permute.xlu0 %519 }
  0xa4   : > { %641 = vrot.lane.b32.xlu1 %v566_v17, %s3903_s20  ;;  %s2200_s20 = smul.u32 20, %s4030_s30  ;;  %s2399_s30 = smov 52  }
  0xa5   : > { %659 = vrot.lane.b32.xlu2 %v2590_v49, %s2393_s29 }
  0xa6   : > { %v2726_v53 = vpop.permute.xlu1 %523  ;;  %s345_s19 = sadd.s32 %s2200_s20, %s2513_s18  ;;  %s2398_s20 = smov 48  }
  0xa7   : > { %v2728_v54 = vpop.permute.xlu2 %569  ;;  %s2125_s17 = sshll.u32 %s345_s19, 2  ;;  %s2397_s19 = smov 44  }
  0xa8   : > { %3937 = vst [vmem:[#allocation9_spill] sm:$0xff] %v2728_v54  ;;  %s2769_s13 = scalar_lea.vmem %s3897_s1, %s2125_s17  ;;  %s2396_s17 = smov 40  }
  0xa9   : > { %655 = vrot.lane.b32.xlu0 %v2588_v48, %s2393_s29  ;;  %v383_v7 = vld [vmem:[%s2769_s13 + $0x8] sm:$0xf]  ;;  %v389_v19 = vld [vmem:[%s2769_s13 + $0x20] sm:$0xf]  ;;  %v385_v5 = vld [vmem:[%s2769_s13 + $0x10] sm:$0xf] }
  0xaa   : > { %v700_v26 = vunpack.c.l.b16 %v389_v19  ;;  %v386_v28 = vld [vmem:[%s2769_s13 + $0x14] sm:$0x1]  ;;  %v698_v27 = vunpack.c.l.b16 %v385_v5  ;;  %v387_v22 = vld [vmem:[%s2769_s13 + $0x18] sm:$0xf]  ;;  %v382_v9 = vld [vmem:[%s2769_s13 + $0x4] sm:$0x1] }
  0xab   : > { %v2733_v56 = vpop.permute.xlu0 %529  ;;  %v738_v31 = vunpack.c.l.b16 %v386_v28  ;;  %v395_v32 = vld [vmem:[%s2769_s13 + $0x38] sm:$0xf]  ;;  %v699_v34 = vunpack.c.l.b16 %v387_v22  ;;  %v384_v35 = vld [vmem:[%s2769_s13 + $0xc] sm:$0x1]  ;;  %v391_v45 = vld [vmem:[%s2769_s13 + $0x28] sm:$0xf] }
  0xac   : > { %657 = vrot.lane.b32.xlu1 %v2598_v62, %s2393_s29  ;;  %v2817_v42 = vunpack.c.l.b16 %v395_v32  ;;  %v392_v55 = vld [vmem:[%s2769_s13 + $0x2c] sm:$0x1]  ;;  %v737_v59 = vunpack.c.l.b16 %v384_v35  ;;  %v701_v61 = vunpack.c.l.b16 %v391_v45  ;;  %v390_v22 = vld [vmem:[%s2769_s13 + $0x24] sm:$0x1]  ;;  %v396_v44 = vld [vmem:[%s2769_s13 + $0x3c] sm:$0x1] }
  0xad   : > { %665 = vrot.lane.b32.xlu2 %v2609_v10, %s2393_s29  ;;  %v697_v10 = vunpack.c.l.b16 %v383_v7  ;;  %v2815_v41 = vpack.c.b16 %v738_v31, %v698_v27  ;;  %v2825_v60 = vpack.c.b16 %v699_v34, %v699_v34  ;;  %v388_v7 = vld [vmem:[%s2769_s13 + $0x1c] sm:$0x1]  ;;  %v741_v19 = vunpack.c.l.b16 %v392_v55 }
  0xae   : > { %v2739_v49 = vpop.permute.xlu1 %531  ;;  %v740_v55 = vunpack.c.l.b16 %v390_v22 }
  0xaf   : > { %v2741_v58 = vpop.permute.xlu2 %575  ;;  %v769_v5 = vshll.u32 %v2815_v41, 16  ;;  %v767_v32 = vshrl.u32 %v2815_v41, 16 }
  0xb0   : > { %3938 = vst [vmem:[#allocation10_spill] sm:$0xff] %v2741_v58  ;;  %v2871_v22 = vpack.c.b16 %v740_v55, %v700_v26 }
  0xb1   : > { %661 = vrot.lane.b32.xlu0 %v2601_v0, %s2393_s29  ;;  %v771_v35 = vrot.slane %v769_v5, 1 }
  0xb3   : > { %v2745_v48 = vpop.permute.xlu0 %543 }
  0xb4   : > { %663 = vrot.lane.b32.xlu1 %v2607_v8, %s2393_s29 }
  0xb5   : > { %672 = vrot.lane.b32.xlu2 %v2621_v15, %s2394_s9 }
  0xb6   : > { %v2751_v62 = vpop.permute.xlu1 %545 }
  0xb7   : > { %v2753_v63 = vpop.permute.xlu2 %581 }
  0xb9   : > { %667 = vrot.lane.b32.xlu0 %v592_v36, %s2393_s29  ;;  %v736_v36 = vunpack.c.l.b16 %v382_v9  ;;  %v2849_v9 = vpack.c.b16 %v741_v19, %v701_v61  ;;  %v2865_v19 = vor.u32 %v771_v35, %v767_v32 }
  0xbb   : > { %v2757_v0 = vpop.permute.xlu0 %549  ;;  %3948 = vst [vmem:[#allocation20_spill] sm:$0xff] %v2865_v19  ;;  %v790_v58 = vshll.u32 %v2849_v9, 16  ;;  %v788_v35 = vshrl.u32 %v2849_v9, 16 }
  0xbc   : > { %3939 = vst [vmem:[#allocation11_spill] sm:$0xff] %v2757_v0  ;;  %669 = vrot.lane.b32.xlu1 %v654_v1, %s2393_s29 }
  0xbd   : > { %678 = vrot.lane.b32.xlu2 %v2633_v21, %s2394_s9  ;;  %v2785_v21 = vpack.c.b16 %v697_v10, %v697_v10 }
  0xbe   : > { %v2762_v3 = vpop.permute.xlu1 %551 }
  0xbf   : > { %v2764_v4 = vpop.permute.xlu2 %597 }
  0xc1   : > { %674 = vrot.lane.b32.xlu0 %v2613_v12, %s2394_s9  ;;  %v381_v12 = vld [vmem:[%s2769_s13] sm:$0xf] }
  0xc3   : > { %v2774_v8 = vpop.permute.xlu0 %555 }
  0xc4   : > { %676 = vrot.lane.b32.xlu1 %v2631_v18, %s2394_s9  ;;  %v696_v18 = vunpack.c.l.b16 %v381_v12  ;;  %v2834_v12 = vpack.c.b16 %v2817_v42, %v2817_v42 }
  0xc5   : > { %684 = vrot.lane.b32.xlu2 %v609_v39, %s2394_s9  ;;  %v2813_v39 = vpack.c.b16 %v698_v27, %v698_v27  ;;  %v739_v27 = vunpack.c.l.b16 %v388_v7 }
  0xc6   : > { %v2779_v14 = vpop.permute.xlu1 %567  ;;  %v704_v17 = vpack.c.b16 %v696_v18, %v696_v18  ;;  %v2827_v1 = vpack.c.b16 %v736_v36, %v696_v18  ;;  %3945 = vst [vmem:[#allocation17_spill] sm:$0xff] %v2834_v12  ;;  %v2844_v18 = vpack.c.b16 %v701_v61, %v701_v61  ;;  %v394_v61 = vld [vmem:[%s2769_s13 + $0x34] sm:$0x1] }
  0xc7   : > { %v2781_v15 = vpop.permute.xlu2 %603  ;;  %3943 = vst [vmem:[#allocation15_spill] sm:$0xff] %v2813_v39 }
  0xc8   : > { %3946 = vst [vmem:[#allocation18_spill] sm:$0xff] %v2844_v18  ;;  %v753_v5 = vshrl.u32 %v2827_v1, 16 }
  0xc9   : > { %680 = vrot.lane.b32.xlu0 %v2624_v16, %s2394_s9 }
  0xcb   : > { %v2789_v20 = vpop.permute.xlu0 %571 }
  0xcc   : > { %682 = vrot.lane.b32.xlu1 %v2642_v24, %s2394_s9  ;;  %v2802_v24 = vpack.c.b16 %v700_v26, %v700_v26 }
  0xcd   : > { %714 = vrot.lane.b32.xlu2 %v2785_v21, %s2395_s16 }
  0xce   : > { %v2795_v16 = vpop.permute.xlu1 %573  ;;  %3942 = vst [vmem:[#allocation14_spill] sm:$0xff] %v2802_v24 }
  0xcf   : > { %3940 = vst [vmem:[#allocation12_spill] sm:$0xff] %v2795_v16  ;;  %v2799_v30 = vpop.permute.xlu2 %610 }
  0xd0   : > { %3941 = vst [vmem:[#allocation13_spill] sm:$0xff] %v2799_v30 }
  0xd1   : > { %686 = vrot.lane.b32.xlu0 %v671_v25, %s2394_s9  ;;  %v393_v25 = vld [vmem:[%s2769_s13 + $0x30] sm:$0xf] }
  0xd2   : > { %v702_v31 = vunpack.c.l.b16 %v393_v25 }
  0xd3   : > { %v2807_v33 = vpop.permute.xlu0 %577 }
  0xd4   : > { %712 = vrot.lane.b32.xlu1 %v704_v17, %s2395_s16  ;;  %v2840_v17 = vpack.c.b16 %v737_v59, %v697_v10  ;;  %v755_v10 = vshll.u32 %v2827_v1, 16  ;;  %v2857_v59 = vpack.c.b16 %v739_v27, %v699_v34  ;;  %v2859_v7 = vpack.c.b16 %v702_v31, %v702_v31 }
  0xd5   : > { %720 = vrot.lane.b32.xlu2 %v2802_v24, %s2395_s16  ;;  %v742_v34 = vunpack.c.l.b16 %v394_v61  ;;  %v743_v61 = vunpack.c.l.b16 %v396_v44  ;;  %v781_v44 = vshrl.u32 %v2871_v22, 16 }
  0xd6   : > { %v2820_v52 = vpop.permute.xlu1 %579  ;;  %v762_v25 = vshll.u32 %v2840_v17, 16  ;;  %v760_v27 = vshrl.u32 %v2840_v17, 16 }
  0xd7   : > { %v2823_v57 = vpop.permute.xlu2 %616  ;;  %v2888_v38 = vpack.c.b16 %v742_v34, %v702_v31 }
  0xd8   : > { %3944 = vst [vmem:[#allocation16_spill] sm:$0xff] %v2823_v57  ;;  %v757_v57 = vrot.slane %v755_v10, 1  ;;  %v764_v0 = vrot.slane %v762_v25, 1  ;;  %v792_v10 = vrot.slane %v790_v58, 1  ;;  %v783_v25 = vshll.u32 %v2871_v22, 16 }
  0xd9   : > { %716 = vrot.lane.b32.xlu0 %v2813_v39, %s2395_s16  ;;  %v797_v34 = vshll.u32 %v2888_v38, 16 }
  0xda   : > { %v758_v32 = vor.u32 %v757_v57, %v753_v5  ;;  %v2885_v6 = vor.u32 %v764_v0, %v760_v27  ;;  %v2891_v30 = vor.u32 %v792_v10, %v788_v35  ;;  %v774_v57 = vshrl.u32 %v2857_v59, 16 }
  0xdb   : > { %v2838_v28 = vpop.permute.xlu0 %593  ;;  %v785_v0 = vrot.slane %v783_v25, 1  ;;  %v824_v35 = vrot.slane %v2827_v1, 1  ;;  %v795_v10 = vshrl.u32 %v2888_v38, 16 }
  0xdc   : > { %718 = vrot.lane.b32.xlu1 %v2825_v60, %s2395_s16  ;;  %3952 = vst [vmem:[#allocation24_spill] sm:$0xff] %v2891_v30 }
  0xdd   : > { %726 = vrot.lane.b32.xlu2 %v2834_v12, %s2395_s16 }
  0xde   : > { %v2853_v36 = vpop.permute.xlu1 %595 }
  0xdf   : > { %3947 = vst [vmem:[#allocation19_spill] sm:$0xff] %v2853_v36  ;;  %v2855_v45 = vpop.permute.xlu2 %622 }
  0xe1   : > { %722 = vrot.lane.b32.xlu0 %v2844_v18, %s2395_s16 }
  0xe3   : > { %v2869_v16 = vpop.permute.xlu0 %599 }
  0xe4   : > { %3949 = vst [vmem:[#allocation21_spill] sm:$0xff] %v2869_v16  ;;  %724 = vrot.lane.b32.xlu1 %v2859_v7, %s2395_s16  ;;  %v776_v16 = vshll.u32 %v2857_v59, 16 }
  0xe5   : > { %812 = vrot.lane.b32.xlu2 %v2865_v19, %s2396_s17 }
  0xe6   : > { %v2881_v26 = vpop.permute.xlu1 %601  ;;  %v778_v58 = vrot.slane %v776_v16, 1 }
  0xe7   : > { %3950 = vst [vmem:[#allocation22_spill] sm:$0xff] %v2881_v26  ;;  %v2883_v55 = vpop.permute.xlu2 %631  ;;  %v2897_v26 = vpack.c.b16 %v743_v61, %v2817_v42  ;;  %v799_v61 = vrot.slane %v797_v34, 1  ;;  %v3914_v34 = vrot.slane %v2857_v59, 1 }
  0xe8   : > { %3951 = vst [vmem:[#allocation23_spill] sm:$0xff] %v2883_v55  ;;  %v2904_v31 = vor.u32 %v778_v58, %v774_v57 }
  0xe9   : > { %808 = vrot.lane.b32.xlu0 %v758_v32, %s2396_s17  ;;  %v2911_v32 = vor.u32 %v785_v0, %v781_v44  ;;  %v804_v42 = vshll.u32 %v2897_v26, 16  ;;  %v802_v57 = vshrl.u32 %v2897_v26, 16  ;;  %v2924_v44 = vor.u32 %v799_v61, %v795_v10 }
  0xea   : > { %3953 = vst [vmem:[#allocation25_spill] sm:$0xff] %v2904_v31  ;;  %v3916_v61 = vrot.slane %v2815_v41, 1 }
  0xeb   : > { %v2894_v5 = vpop.permute.xlu0 %605  ;;  %v806_v58 = vrot.slane %v804_v42, 1  ;;  %3956 = vst [vmem:[#allocation28_spill] sm:$0xff] %v2924_v44  ;;  %v825_v42 = vrot.slane %v2840_v17, 1  ;;  %v3917_v17 = vrot.slane %v2871_v22, 1 }
  0xec   : > { %810 = vrot.lane.b32.xlu1 %v2885_v6, %s2396_s17 }
  0xed   : > { %818 = vrot.lane.b32.xlu2 %v2891_v30, %s2396_s17  ;;  %v2930_v1 = vor.u32 %v806_v58, %v802_v57  ;;  %v3915_v57 = vrot.slane %v2888_v38, 1 }
  0xee   : > { %v2907_v27 = vpop.permute.xlu1 %607 }
  0xef   : > { %v2909_v16 = vpop.permute.xlu2 %637 }
  0xf0   : > { %3954 = vst [vmem:[#allocation26_spill] sm:$0xff] %v2909_v16 }
  0xf1   : > { %814 = vrot.lane.b32.xlu0 %v2904_v31, %s2396_s17 }
  0xf3   : > { %v2918_v25 = vpop.permute.xlu0 %612 }
  0xf4   : > { %3955 = vst [vmem:[#allocation27_spill] sm:$0xff] %v2918_v25  ;;  %816 = vrot.lane.b32.xlu1 %v2911_v32, %s2396_s17  ;;  %v3918_v25 = vrot.slane %v2849_v9, 1 }
  0xf5   : > { %832 = vrot.lane.b32.xlu2 %v824_v35, %s2397_s19 }
  0xf6   : > { %v2926_v0 = vpop.permute.xlu1 %614 }
  0xf7   : > { %v2928_v16 = vpop.permute.xlu2 %643 }
  0xf9   : > { %820 = vrot.lane.b32.xlu0 %v2924_v44, %s2396_s17 }
  0xfb   : > { %v2935_v55 = vpop.permute.xlu0 %618 }
  0xfc   : > { %3957 = vst [vmem:[#allocation29_spill] sm:$0xff] %v2935_v55  ;;  %822 = vrot.lane.b32.xlu1 %v2930_v1, %s2396_s17 }
  0xfd   : > { %838 = vrot.lane.b32.xlu2 %v3914_v34, %s2397_s19 }
  0xfe   : > { %v2943_v35 = vpop.permute.xlu1 %620 }
  0xff   : > { %v2945_v10 = vpop.permute.xlu2 %659 }
 0x101   : > { %834 = vrot.lane.b32.xlu0 %v825_v42, %s2397_s19 }
 0x103   : > { %v2950_v58 = vpop.permute.xlu0 %624 }
 0x104   : > { %836 = vrot.lane.b32.xlu1 %v3916_v61, %s2397_s19 }
 0x105   : > { %844 = vrot.lane.b32.xlu2 %v3915_v57, %s2397_s19  ;;  %v3921_v57 = vrot.slane %v2897_v26, 1 }
 0x106   : > { %v2959_v34 = vpop.permute.xlu1 %629 }
 0x107   : > { %3958 = vst [vmem:[#allocation30_spill] sm:$0xff] %v2959_v34  ;;  %v2961_v55 = vpop.permute.xlu2 %665 }
 0x109   : > { %840 = vrot.lane.b32.xlu0 %v3917_v17, %s2397_s19  ;;  %v397_v17 = vld [vmem:[%s2769_s13 + $0x40] sm:$0xf] }
 0x10b   : > { %v2967_v36 = vpop.permute.xlu0 %633 }
 0x10c   : > { %842 = vrot.lane.b32.xlu1 %v3918_v25, %s2397_s19  ;;  %v849_v25 = vunpack.c.l.b16 %v397_v17 }
 0x10d   : > { %853 = vrot.lane.b32.xlu2 %v2813_v39, %s2398_s20 }
 0x10e   : > { %v2974_v61 = vpop.permute.xlu1 %635 }
 0x10f   : > { %3959 = vst [vmem:[#allocation31_spill] sm:$0xff] %v2974_v61  ;;  %v2976_v34 = vpop.permute.xlu2 %672  ;;  %v2991_v61 = vpack.c.b16 %v849_v25, %v849_v25 }
 0x110   : > { %3960 = vst [vmem:[#allocation32_spill] sm:$0xff] %v2976_v34 }
 0x111   : > { %846 = vrot.lane.b32.xlu0 %v3921_v57, %s2397_s19  ;;  %3962 = vst [vmem:[#allocation34_spill] sm:$0xff] %v2991_v61  ;;  %s2400_s19 = smov 56  }
 0x113   : > { %v2982_v54 = vpop.permute.xlu0 %639 }
 0x114   : > { %851 = vrot.lane.b32.xlu1 %v2785_v21, %s2398_s20 }
 0x115   : > { %859 = vrot.lane.b32.xlu2 %v2844_v18, %s2398_s20 }
 0x116   : > { %v2986_v39 = vpop.permute.xlu1 %641 }
 0x117   : > { %v2988_v13 = vpop.permute.xlu2 %678 }
 0x118   : > { %3961 = vst [vmem:[#allocation33_spill] sm:$0xff] %v2988_v13  ;;  %v398_v13 = vld [vmem:[%s2769_s13 + $0x44] sm:$0x1] }
 0x119   : > { %855 = vrot.lane.b32.xlu0 %v2825_v60, %s2398_s20 }
 0x11b   : > { %v2993_v34 = vpop.permute.xlu0 %655 }
 0x11c   : > { %3963 = vst [vmem:[#allocation35_spill] sm:$0xff] %v2993_v34  ;;  %857 = vrot.lane.b32.xlu1 %v2802_v24, %s2398_s20  ;;  %v868_v24 = vunpack.c.l.b16 %v398_v13 }
 0x11d   : > { %865 = vrot.lane.b32.xlu2 %v2991_v61, %s2398_s20 }
 0x11e   : > { %v2997_v57 = vpop.permute.xlu1 %657 }
 0x11f   : > { %3964 = vst [vmem:[#allocation36_spill] sm:$0xff] %v2997_v57  ;;  %v2999_v21 = vpop.permute.xlu2 %684  ;;  %v3014_v57 = vpack.c.b16 %v868_v24, %v849_v25 }
 0x121   : > { %861 = vrot.lane.b32.xlu0 %v2859_v7, %s2398_s20 }
 0x123   : > { %v3002_v17 = vpop.permute.xlu0 %661 }
 0x124   : > { %3965 = vst [vmem:[#allocation37_spill] sm:$0xff] %v3002_v17  ;;  %863 = vrot.lane.b32.xlu1 %v2834_v12, %s2398_s20  ;;  %s349_s20 = sadd.s32 2, %s2369_s24 }
 0x125   : > { %881 = vrot.lane.b32.xlu2 %v2904_v31, %s2399_s30  ;;  %v873_v31 = vshll.u32 %v3014_v57, 16  ;;  %p3084_p1 = scmp.lt.s32.totalorder %s349_s20, 9 }
 0x126   : > { %v3007_v18 = vpop.permute.xlu1 %663 }
 0x127   : > { %3966 = vst [vmem:[#allocation38_spill] sm:$0xff] %v3007_v18  ;;  %v3009_v34 = vpop.permute.xlu2 %714  ;;  %v875_v13 = vrot.slane %v873_v31, 1  ;;  %s4032_s20 = smov (!%p3084_p1, %s349_s20), 9 }
 0x129   : > { %877 = vrot.lane.b32.xlu0 %v2885_v6, %s2399_s30  ;;  %v871_v6 = vshrl.u32 %v3014_v57, 16 }
 0x12b   : > { %v3012_v61 = vpop.permute.xlu0 %667 }
 0x12c   : > { %879 = vrot.lane.b32.xlu1 %v2865_v19, %s2399_s30  ;;  %v953_v19 = vsel %vm929_vm0, %v2582_v43, %v2739_v49 }
 0x12d   : > { %887 = vrot.lane.b32.xlu2 %v2924_v44, %s2399_s30  ;;  %v3027_v44 = vor.u32 %v875_v13, %v871_v6  ;;  %v938_v6 = vsel %vm929_vm0, %v2524_v2, %v2715_v47  ;;  %v3970_v47 = vrot.slane %v2857_v59, 1 }
 0x12e   : > { %v670_v12 = vpop.permute.xlu1 %669 }
 0x12f   : > { %v3018_v17 = vpop.permute.xlu2 %720 }
 0x130   : > { %3967 = vst [vmem:[#allocation39_spill] sm:$0xff] %v3018_v17 }
 0x131   : > { %883 = vrot.lane.b32.xlu0 %v2911_v32, %s2399_s30 }
 0x133   : > { %v3022_v18 = vpop.permute.xlu0 %674 }
 0x134   : > { %885 = vrot.lane.b32.xlu1 %v2891_v30, %s2399_s30  ;;  %v970_v30 = vsel %vm954_vm1, %v953_v19, %v2774_v8 }
 0x135   : > { %894 = vrot.lane.b32.xlu2 %v825_v42, %s2400_s19  ;;  %v987_v31 = vsel %vm971_vm2, %v970_v30, %v2753_v63  ;;  %v3968_v42 = vrot.slane %v2871_v22, 1  ;;  %v960_v63 = vsel %vm954_vm1, %v938_v6, %v2751_v62  ;;  %v3969_v30 = vrot.slane %v2815_v41, 1 }
 0x136   : > { %v677_v24 = vpop.permute.xlu1 %676  ;;  %v1004_v43 = vsel %vm988_vm3, %v987_v31, %v2907_v27  ;;  %v977_v27 = vsel %vm971_vm2, %v960_v63, %v2789_v20  ;;  %v3971_v20 = vrot.slane %v2897_v26, 1 }
 0x137   : > { %v727_v25 = vpop.permute.xlu2 %726  ;;  %v1021_v8 = vsel %vm1005_vm4, %v1004_v43, %v2950_v58  ;;  %v994_v31 = vsel %vm988_vm3, %v977_v27, %v2764_v4  ;;  %v947_v4 = vsel %vm929_vm0, %v2558_v23, %v2702_v40 }
 0x138   : > { %v1038_v58 = vsel %vm1022_vm5, %v1021_v8, %v2928_v16  ;;  %v966_v6 = vsel %vm954_vm1, %v947_v4, %v2762_v3  ;;  %v3974_v3 = vrot.slane %v2888_v38, 1  ;;  %v3980_v4 = vld [vmem:[#allocation27_spill] sm:$0xff] }
 0x139   : > { %889 = vrot.lane.b32.xlu0 %v2930_v1, %s2399_s30  ;;  %v1055_v13 = vsel %vm1039_vm6, %v1038_v58, %v670_v12  ;;  %v1011_v12 = vsel %vm1005_vm4, %v994_v31, %v2926_v0  ;;  %v950_v0 = vsel %vm929_vm0, %v2566_v29, %v2733_v56  ;;  %v983_v23 = vsel %vm971_vm2, %v966_v6, %v2807_v33  ;;  %v3976_v31 = vld [vmem:[#allocation9_spill] sm:$0xff] }
 0x13a   : > { %v1028_v43 = vsel %vm1022_vm5, %v1011_v12, %v2967_v36  ;;  %v3973_v36 = vrot.slane %v2849_v9, 1  ;;  %v968_v56 = vsel %vm954_vm1, %v950_v0, %v2717_v50  ;;  %v3979_v12 = vld [vmem:[#allocation13_spill] sm:$0xff]  ;;  %v3981_v0 = vld [vmem:[#allocation30_spill] sm:$0xff] }
 0x13b   : > { %v3035_v17 = vpop.permute.xlu0 %680  ;;  %v1045_v40 = vsel %vm1039_vm6, %v1028_v43, %v2945_v10  ;;  %v985_v33 = vsel %vm971_vm2, %v968_v56, %v2820_v52  ;;  %v1000_v10 = vsel %vm988_vm3, %v983_v23, %v2781_v15 }
 0x13c   : > { %891 = vrot.lane.b32.xlu1 %v3027_v44, %s2399_s30  ;;  %v1062_v63 = vsel %vm1056_vm7, %v1045_v40, %v677_v24  ;;  %v1002_v24 = vsel %vm988_vm3, %v985_v33, %v2894_v5  ;;  %v1017_v58 = vsel %vm1005_vm4, %v1000_v10, %v2943_v35  ;;  %s2201_s30 = smul.u32 20, %s4032_s20  ;;  %v3982_v40 = vld [vmem:[#allocation35_spill] sm:$0xff]  ;;  %s4013_s20 = smov 20  }
 0x13d   : > { %900 = vrot.lane.b32.xlu2 %v3968_v42, %s2400_s19  ;;  %v1034_v15 = vsel %vm1022_vm5, %v1017_v58, %v2982_v54  ;;  %v3986_v33 = vld [vmem:[#allocation11_spill] sm:$0xff] }
 0x13e   : > { %v3045_v49 = vpop.permute.xlu1 %682 }
 0x13f   : > { %v813_v19 = vpop.permute.xlu2 %812 }
 0x141   : > { %896 = vrot.lane.b32.xlu0 %v3969_v30, %s2400_s19 }
 0x143   : > { %v687_v2 = vpop.permute.xlu0 %686 }
 0x144   : > { %898 = vrot.lane.b32.xlu1 %v3970_v47, %s2400_s19  ;;  %v1072_v62 = vsel %vm1056_vm7, %v1055_v13, %v687_v2  ;;  %v1019_v2 = vsel %vm1005_vm4, %v1002_v24, %v2855_v45  ;;  %v3975_v45 = vld [vmem:[#allocation6_spill] sm:$0xff]  ;;  %v3988_v24 = vld [vmem:[#allocation23_spill] sm:$0xff] }
 0x145   : > { %906 = vrot.lane.b32.xlu2 %v3971_v20, %s2400_s19  ;;  %v3072_v16 = vsel %vm1073_vm8, %v1072_v62, %v727_v25  ;;  %v361_v25 = vld [vmem:[%s2519_s12] sm:$0xf]  ;;  %s2401_s12 = smov 60   ;;  %v941_v62 = vsel %vm929_vm0, %v3975_v45, %v2726_v53  ;;  %v3978_v20 = vld [vmem:[#allocation19_spill] sm:$0xff]  ;;  %v3994_v45 = vld [vmem:[#allocation18_spill] sm:$0xff] }
 0x146   : > { %v3077_v42 = vpop.permute.xlu1 %712  ;;  %v932_v29 = vsel %vm929_vm0, %v361_v25, %v2711_v46  ;;  %v893_v46 = vrot.slane %v3014_v57, 1 }
 0x147   : > { %v819_v8 = vpop.permute.xlu2 %818 }
 0x149   : > { %902 = vrot.lane.b32.xlu0 %v3973_v36, %s2400_s19 }
 0x14b   : > { %v717_v30 = vpop.permute.xlu0 %716 }
 0x14c   : > { %904 = vrot.lane.b32.xlu1 %v3974_v3, %s2400_s19  ;;  %v1079_v27 = vsel %vm1073_vm8, %v1062_v63, %v717_v30  ;;  %v3985_v3 = vld [vmem:[#allocation8_spill] sm:$0xff] }
 0x14d   : > { %915 = vrot.lane.b32.xlu2 %v2825_v60, %s2401_s12  ;;  %v3122_v50 = vsel %vm1090_vm9, %v1079_v27, %v813_v19  ;;  %v935_v60 = vsel %vm929_vm0, %v2538_v11, %v2720_v51  ;;  %v956_v19 = vsel %vm954_vm1, %v932_v29, %v2686_v37  ;;  %v1036_v11 = vsel %vm1022_vm5, %v1019_v2, %v2986_v39  ;;  %v399_v51 = vld [vmem:[%s2769_s13 + $0x48] sm:$0xf]  ;;  %v3977_v39 = vld [vmem:[#allocation15_spill] sm:$0xff] }
 0x14e   : > { %v3128_v52 = vpop.permute.xlu1 %718  ;;  %v958_v5 = vsel %vm954_vm1, %v935_v60, %v2745_v48  ;;  %v973_v35 = vsel %vm971_vm2, %v956_v19, %v2779_v14  ;;  %v1051_v37 = vsel %vm1039_vm6, %v1034_v15, %v2961_v55  ;;  %v1053_v48 = vsel %vm1039_vm6, %v1036_v11, %v3012_v61  ;;  %v3983_v29 = vld [vmem:[#allocation7_spill] sm:$0xff]  ;;  %v3989_v15 = vld [vmem:[#allocation14_spill] sm:$0xff]  ;;  %v3990_v19 = vld [vmem:[#allocation21_spill] sm:$0xff] }
 0x14f   : > { %v833_v13 = vpop.permute.xlu2 %832  ;;  %v990_v54 = vsel %vm988_vm3, %v973_v35, %v2838_v28  ;;  %v1068_v14 = vsel %vm1056_vm7, %v1051_v37, %v3045_v49  ;;  %v975_v28 = vsel %vm971_vm2, %v958_v5, %v3976_v31  ;;  %v3171_v43 = vunpack.c.l.b16 %v399_v51  ;;  %v3991_v35 = vld [vmem:[#allocation36_spill] sm:$0xff]  ;;  %v3995_v31 = vld [vmem:[#allocation22_spill] sm:$0xff] }
 0x150   : > { %v992_v61 = vsel %vm988_vm3, %v975_v28, %v3978_v20  ;;  %v1007_v49 = vsel %vm1005_vm4, %v990_v54, %v3979_v12  ;;  %v1070_v23 = vsel %vm1056_vm7, %v1053_v48, %v2999_v21  ;;  %v962_v27 = vsel %vm954_vm1, %v941_v62, %v3985_v3  ;;  %v3992_v54 = vld [vmem:[#allocation32_spill] sm:$0xff]  ;;  %v3997_v20 = vld [vmem:[#allocation29_spill] sm:$0xff]  ;;  %v3998_v12 = vld [vmem:[#allocation31_spill] sm:$0xff] }
 0x151   : > { %908 = vrot.lane.b32.xlu0 %v893_v46, %s2400_s19  ;;  %s356_s19 = sadd.s32 %s2201_s30, %s2513_s18  ;;  %v1009_v25 = vsel %vm1005_vm4, %v992_v61, %v3980_v4  ;;  %v1024_v6 = vsel %vm1022_vm5, %v1007_v49, %v3981_v0  ;;  %v3987_v46 = vld [vmem:[#allocation12_spill] sm:$0xff]  ;;  %v912_v60 = vpack.c.b16 %v3171_v43, %v3171_v43  ;;  %v3999_v0 = vld [vmem:[#allocation37_spill] sm:$0xff]  ;;  %s4014_s30 = smov 24  }
 0x152   : > { %v1041_v63 = vsel %vm1039_vm6, %v1024_v6, %v3982_v40  ;;  %s2126_s18 = sshll.u32 %s356_s19, 2  ;;  %v979_v21 = vsel %vm971_vm2, %v962_v27, %v3987_v46  ;;  %v1026_v58 = vsel %vm1022_vm5, %v1009_v25, %v3988_v24  ;;  %v4003_v3 = vld [vmem:[#allocation33_spill] sm:$0xff]  ;;  %v4004_v46 = vld [vmem:[#allocation34_spill] sm:$0xff] }
 0x153   : > { %v723_v47 = vpop.permute.xlu0 %722  ;;  %v996_v5 = vsel %vm988_vm3, %v979_v21, %v3990_v19  ;;  %v1043_v2 = vsel %vm1039_vm6, %v1026_v58, %v3991_v35  ;;  %v1058_v11 = vsel %vm1056_vm7, %v1041_v63, %v3992_v54  ;;  %s3209_s19 = scalar_lea.vmem %s3898_s2, %s2126_s18  ;;  %v400_v58 = vld [vmem:[%s2769_s13 + $0x4c] sm:$0x1]  ;;  %s4010_s13 = smov 8  }
 0x154   : > { %913 = vrot.lane.b32.xlu1 %v3977_v39, %s2401_s12  ;;  %v1085_v55 = vsel %vm1073_vm8, %v1068_v14, %v723_v47  ;;  %v1060_v37 = vsel %vm1056_vm7, %v1043_v2, %v3022_v18  ;;  %v1075_v51 = vsel %vm1073_vm8, %v1058_v11, %v3077_v42  ;;  %v3993_v14 = vld [vmem:[#allocation10_spill] sm:$0xff]  ;;  %v3996_v39 = vld [vmem:[#allocation16_spill] sm:$0xff]  ;;  %v409_v18 = vld [vmem:[%s3209_s19 + $0x20] sm:$0xf]  ;;  %v1193_v2 = vunpack.c.l.b16 %v400_v58  ;;  %s4012_s18 = smov 16  }
 0x155   : > { %921 = vrot.lane.b32.xlu2 %v2859_v7, %s2401_s12  ;;  %v3174_v53 = vsel %vm1090_vm9, %v1085_v55, %v819_v8  ;;  %v3984_v8 = vld [vmem:[#allocation5_spill] sm:$0xff]  ;;  %v1013_v55 = vsel %vm1005_vm4, %v996_v5, %v3996_v39  ;;  %v1077_v25 = vsel %vm1073_vm8, %v1060_v37, %v3009_v34  ;;  %v3238_v40 = vunpack.c.l.b16 %v409_v18  ;;  %v415_v19 = vld [vmem:[%s3209_s19 + $0x38] sm:$0xf]  ;;  %v414_v58 = vld [vmem:[%s3209_s19 + $0x34] sm:$0x1] }
 0x156   : > { %v725_v36 = vpop.permute.xlu1 %724  ;;  %v944_v56 = vsel %vm929_vm0, %v3984_v8, %v3983_v29  ;;  %v1030_v49 = vsel %vm1022_vm5, %v1013_v55, %v3998_v12  ;;  %v4001_v29 = vld [vmem:[#allocation17_spill] sm:$0xff]  ;;  %v4002_v8 = vld [vmem:[#allocation38_spill] sm:$0xff]  ;;  %v4006_v11 = vld [vmem:[#allocation20_spill] sm:$0xff]  ;;  %v3269_v37 = vunpack.c.l.b16 %v415_v19 }
 0x157   : > { %v1087_v7 = vsel %vm1073_vm8, %v1070_v23, %v725_v36  ;;  %v839_v30 = vpop.permute.xlu2 %838  ;;  %v964_v10 = vsel %vm954_vm1, %v944_v56, %v3986_v33  ;;  %v1047_v6 = vsel %vm1039_vm6, %v1030_v49, %v3999_v0  ;;  %v1238_v24 = vpack.c.b16 %v3238_v40, %v3238_v40 }
 0x158   : > { %v981_v47 = vsel %vm971_vm2, %v964_v10, %v3993_v14  ;;  %v1064_v34 = vsel %vm1056_vm7, %v1047_v6, %v4003_v3  ;;  %v412_v3 = vld [vmem:[%s3209_s19 + $0x2c] sm:$0x1] }
 0x159   : > { %917 = vrot.lane.b32.xlu0 %v3989_v15, %s2401_s12  ;;  %v998_v28 = vsel %vm988_vm3, %v981_v47, %v3995_v31  ;;  %v1081_v33 = vsel %vm1073_vm8, %v1064_v34, %v3128_v52  ;;  %v1271_v54 = vshrl.u32 %v1238_v24, 16 }
 0x15a   : > { %v1015_v61 = vsel %vm1005_vm4, %v998_v28, %v3997_v20  ;;  %v413_v28 = vld [vmem:[%s3209_s19 + $0x30] sm:$0xf] }
 0x15b   : > { %v809_v48 = vpop.permute.xlu0 %808  ;;  %v1273_v47 = vrot.slane %v1271_v54, 7  ;;  %v1232_v20 = vunpack.c.l.b16 %v413_v28 }
 0x15c   : > { %919 = vrot.lane.b32.xlu1 %v3994_v45, %s2401_s12  ;;  %v1092_v62 = vsel %vm1090_vm9, %v1075_v51, %v809_v48  ;;  %v4007_v48 = vld [vmem:[#allocation25_spill] sm:$0xff]  ;;  %v1274_v45 = vshll.u32 %v1238_v24, 16  ;;  %v1327_v24 = vunpack.c.l.b16 %v412_v3 }
 0x15d   : > { %927 = vrot.lane.b32.xlu2 %v912_v60, %s2401_s12  ;;  %v3227_v42 = vsel %vm1107_vm10, %v1092_v62, %v833_v13  ;;  %v4000_v13 = vld [vmem:[#allocation26_spill] sm:$0xff]  ;;  %v4005_v60 = vld [vmem:[#allocation39_spill] sm:$0xff]  ;;  %v1241_v62 = vpack.c.b16 %v3269_v37, %v3269_v37 }
 0x15e   : > { %v811_v4 = vpop.permute.xlu1 %810  ;;  %v1032_v63 = vsel %vm1022_vm5, %v1015_v61, %v4000_v13  ;;  %v4008_v61 = vld [vmem:[#allocation24_spill] sm:$0xff] }
 0x15f   : > { %v1094_v36 = vsel %vm1090_vm9, %v1077_v25, %v811_v4  ;;  %v845_v23 = vpop.permute.xlu2 %844  ;;  %v1049_v56 = vsel %vm1039_vm6, %v1032_v63, %v4002_v8  ;;  %v1292_v12 = vshrl.u32 %v1241_v62, 16  ;;  %v4009_v25 = vld [vmem:[#allocation28_spill] sm:$0xff]  ;;  %v1295_v63 = vshll.u32 %v1241_v62, 16 }
 0x160   : > { %v1066_v27 = vsel %vm1056_vm7, %v1049_v56, %v3035_v17 }
 0x161   : > { %923 = vrot.lane.b32.xlu0 %v4001_v29, %s2401_s12  ;;  %v1083_v52 = vsel %vm1073_vm8, %v1066_v27, %v4005_v60  ;;  %v1294_v13 = vrot.slane %v1292_v12, 7 }
 0x163   : > { %v815_v10 = vpop.permute.xlu0 %814 }
 0x164   : > { %925 = vrot.lane.b32.xlu1 %v4004_v46, %s2401_s12  ;;  %v1098_v21 = vsel %vm1090_vm9, %v1081_v33, %v815_v10  ;;  %v3307_v10 = vor.u32 %v1295_v63, %v1294_v13  ;;  %s4011_s12 = smov 12  }
 0x165   : > { %1206 = vrot.lane.b32.xlu2 %v2911_v32, %s2388_s14  ;;  %v3261_v15 = vsel %vm1107_vm10, %v1098_v21, %v839_v30  ;;  %v411_v32 = vld [vmem:[%s3209_s19 + $0x28] sm:$0xf]  ;;  %v3273_v30 = vpack.c.b16 %v1193_v2, %v3171_v43 }
 0x166   : > { %v817_v17 = vpop.permute.xlu1 %816  ;;  %v1231_v31 = vunpack.c.l.b16 %v411_v32 }
 0x167   : > { %v1100_v5 = vsel %vm1090_vm9, %v1083_v52, %v817_v17  ;;  %v854_v35 = vpop.permute.xlu2 %853 }
 0x168   : > { %v1239_v49 = vpack.c.b16 %v1231_v31, %v1231_v31 }
 0x169   : > { %1202 = vrot.lane.b32.xlu0 %v4006_v11, %s2388_s14  ;;  %v410_v11 = vld [vmem:[%s3209_s19 + $0x24] sm:$0x1] }
 0x16a   : > { %v1278_v29 = vshrl.u32 %v1239_v49, 16  ;;  %v1281_v21 = vshll.u32 %v1239_v49, 16 }
 0x16b   : > { %v821_v51 = vpop.permute.xlu0 %820 }
 0x16c   : > { %1204 = vrot.lane.b32.xlu1 %v4007_v48, %s2388_s14  ;;  %v1104_v14 = vsel %vm1090_vm9, %v1087_v7, %v821_v51  ;;  %v1198_v7 = vshll.u32 %v3273_v30, 16  ;;  %v1280_v46 = vrot.slane %v1278_v29, 7 }
 0x16d   : > { %1212 = vrot.lane.b32.xlu2 %v2930_v1, %s2388_s14  ;;  %v3284_v39 = vsel %vm1107_vm10, %v1104_v14, %v845_v23  ;;  %v3291_v1 = vor.u32 %v1274_v45, %v1273_v47  ;;  %v1240_v23 = vpack.c.b16 %v1232_v20, %v1232_v20  ;;  %v1326_v14 = vunpack.c.l.b16 %v410_v11 }
 0x16e   : > { %v823_v43 = vpop.permute.xlu1 %822  ;;  %v1200_v6 = vrot.slane %v1198_v7, 1  ;;  %v3314_v19 = vor.u32 %v1281_v21, %v1280_v46  ;;  %v416_v7 = vld [vmem:[%s3209_s19 + $0x3c] sm:$0x1] }
 0x16f   : > { %v1106_v55 = vsel %vm1090_vm9, %v3072_v16, %v823_v43  ;;  %v860_v18 = vpop.permute.xlu2 %859  ;;  %v1196_v16 = vshrl.u32 %v3273_v30, 16  ;;  %v1285_v33 = vshrl.u32 %v1240_v23, 16  ;;  %v1329_v49 = vunpack.c.l.b16 %v416_v7 }
 0x171   : > { %1208 = vrot.lane.b32.xlu0 %v4008_v61, %s2388_s14  ;;  %v1201_v27 = vor.u32 %v1200_v6, %v1196_v16  ;;  %v1287_v52 = vrot.slane %v1285_v33, 7  ;;  %v3361_v6 = vpack.c.b16 %v1329_v49, %v3269_v37 }
 0x173   : > { %v835_v4 = vpop.permute.xlu0 %834 }
 0x174   : > { %1210 = vrot.lane.b32.xlu1 %v4009_v25, %s2388_s14  ;;  %v1111_v0 = vsel %vm1107_vm10, %v1094_v36, %v835_v4 }
 0x175   : > { %1306 = vrot.lane.b32.xlu2 %v3291_v1, %s4010_s13  ;;  %v3300_v8 = vsel %vm1124_vm11, %v1111_v0, %v854_v35  ;;  %v3316_v35 = vpack.c.b16 %v1327_v24, %v1231_v31 }
 0x176   : > { %v837_v56 = vpop.permute.xlu1 %836 }
 0x177   : > { %v1113_v34 = vsel %vm1107_vm10, %v3122_v50, %v837_v56  ;;  %v866_v36 = vpop.permute.xlu2 %865  ;;  %v1288_v50 = vshll.u32 %v1240_v23, 16  ;;  %v1392_v47 = vshll.u32 %v3316_v35, 16  ;;  %v1390_v31 = vshrl.u32 %v3316_v35, 16 }
 0x179   : > { %1214 = vrot.lane.b32.xlu0 %v3027_v44, %s2388_s14  ;;  %v1328_v44 = vunpack.c.l.b16 %v414_v58  ;;  %v3324_v51 = vor.u32 %v1288_v50, %v1287_v52  ;;  %v1394_v28 = vrot.slane %v1392_v47, 1 }
 0x17b   : > { %v841_v17 = vpop.permute.xlu0 %840  ;;  %v3328_v48 = vpack.c.b16 %v1328_v44, %v1232_v20  ;;  %v417_v20 = vld [vmem:[%s3209_s19 + $0x40] sm:$0xf] }
 0x17c   : > { %1216 = vrot.lane.b32.xlu1 %v1201_v27, %s2388_s14  ;;  %v1117_v60 = vsel %vm1107_vm10, %v1100_v5, %v841_v17  ;;  %v3352_v4 = vunpack.c.l.b16 %v417_v20 }
 0x17d   : > { %1312 = vrot.lane.b32.xlu2 %v3307_v10, %s4010_s13  ;;  %v3319_v2 = vsel %vm1124_vm11, %v1117_v60, %v860_v18  ;;  %v1399_v23 = vshll.u32 %v3328_v48, 16  ;;  %v1397_v37 = vshrl.u32 %v3328_v48, 16 }
 0x17e   : > { %v843_v54 = vpop.permute.xlu1 %842  ;;  %v1428_v13 = vpack.c.b16 %v3352_v4, %v3352_v4 }
 0x17f   : > { %v1119_v32 = vsel %vm1107_vm10, %v3174_v53, %v843_v54  ;;  %v882_v5 = vpop.permute.xlu2 %881  ;;  %v3337_v53 = vpack.c.b16 %v1326_v14, %v3238_v40  ;;  %v3350_v40 = vor.u32 %v1394_v28, %v1390_v31  ;;  %v1401_v27 = vrot.slane %v1399_v23, 1  ;;  %v403_v23 = vld [vmem:[%s3209_s19 + $0x8] sm:$0xf] }
 0x180   : > { %v1430_v33 = vshrl.u32 %v1428_v13, 16  ;;  %v1433_v60 = vshll.u32 %v1428_v13, 16 }
 0x181   : > { %1308 = vrot.lane.b32.xlu0 %v3314_v19, %s4010_s13  ;;  %v3383_v58 = vor.u32 %v1401_v27, %v1397_v37  ;;  %v3440_v37 = vunpack.c.l.b16 %v403_v23  ;;  %v405_v27 = vld [vmem:[%s3209_s19 + $0x10] sm:$0xf]  ;;  %v419_v23 = vld [vmem:[%s3209_s19 + $0x48] sm:$0xf] }
 0x182   : > { %v1432_v17 = vrot.slane %v1430_v33, 7 }
 0x183   : > { %v847_v45 = vpop.permute.xlu0 %846 }
 0x184   : > { %1310 = vrot.lane.b32.xlu1 %v3324_v51, %s4010_s13  ;;  %v1123_v62 = vsel %vm1107_vm10, %v1106_v55, %v847_v45  ;;  %v1385_v55 = vshll.u32 %v3337_v53, 16 }
 0x185   : > { %1350 = vrot.lane.b32.xlu2 %v3328_v48, %s4011_s12  ;;  %v3341_v43 = vsel %vm1124_vm11, %v1123_v62, %v866_v36  ;;  %v1406_v36 = vshll.u32 %v3361_v6, 16 }
 0x186   : > { %v852_v18 = vpop.permute.xlu1 %851  ;;  %v1387_v16 = vrot.slane %v1385_v55, 1  ;;  %v407_v55 = vld [vmem:[%s3209_s19 + $0x18] sm:$0xf] }
 0x187   : > { %v1126_v61 = vsel %vm1124_vm11, %v3227_v42, %v852_v18  ;;  %v888_v12 = vpop.permute.xlu2 %887  ;;  %v1383_v42 = vshrl.u32 %v3337_v53, 16  ;;  %v1408_v24 = vrot.slane %v1406_v36, 1 }
 0x189   : > { %1346 = vrot.lane.b32.xlu0 %v3337_v53, %s4011_s12 }
 0x18b   : > { %v856_v25 = vpop.permute.xlu0 %855 }
 0x18c   : > { %1348 = vrot.lane.b32.xlu1 %v3316_v35, %s4011_s12  ;;  %v1130_v0 = vsel %vm1124_vm11, %v1113_v34, %v856_v25  ;;  %v3371_v34 = vor.u32 %v1387_v16, %v1383_v42  ;;  %v3427_v16 = vunpack.c.l.b16 %v407_v55 }
 0x18d   : > { %1420 = vrot.lane.b32.xlu2 %v3350_v40, %s4012_s18  ;;  %v3367_v63 = vsel %vm1141_vm12, %v1130_v0, %v882_v5 }
 0x18e   : > { %v858_v29 = vpop.permute.xlu1 %857  ;;  %v1237_v36 = vpack.c.b16 %v3427_v16, %v3427_v16 }
 0x18f   : > { %v1132_v56 = vsel %vm1124_vm11, %v3261_v15, %v858_v29  ;;  %v895_v3 = vpop.permute.xlu2 %894  ;;  %v1404_v15 = vshrl.u32 %v3361_v6, 16 }
 0x191   : > { %1352 = vrot.lane.b32.xlu0 %v3361_v6, %s4011_s12  ;;  %v3390_v11 = vor.u32 %v1408_v24, %v1404_v15  ;;  %v3449_v24 = vunpack.c.l.b16 %v405_v27 }
 0x193   : > { %v862_v46 = vpop.permute.xlu0 %861 }
 0x194   : > { %1418 = vrot.lane.b32.xlu1 %v3371_v34, %s4012_s18  ;;  %v1136_v21 = vsel %vm1124_vm11, %v1119_v32, %v862_v46  ;;  %v3394_v32 = vor.u32 %v1433_v60, %v1432_v17  ;;  %v1264_v60 = vshrl.u32 %v1237_v36, 16 }
 0x195   : > { %1444 = vrot.lane.b32.xlu2 %v3314_v19, %s4013_s20  ;;  %v3386_v52 = vsel %vm1141_vm12, %v1136_v21, %v888_v12 }
 0x196   : > { %v864_v50 = vpop.permute.xlu1 %863 }
 0x197   : > { %v1138_v44 = vsel %vm1124_vm11, %v3284_v39, %v864_v50  ;;  %v901_v54 = vpop.permute.xlu2 %900  ;;  %v401_v39 = vld [vmem:[%s3209_s19] sm:$0xf]  ;;  %v1235_v50 = vpack.c.b16 %v3440_v37, %v3440_v37 }
 0x198   : > { %v3407_v28 = vunpack.c.l.b16 %v401_v39  ;;  %v1266_v39 = vrot.slane %v1264_v60, 7  ;;  %v404_v60 = vld [vmem:[%s3209_s19 + $0xc] sm:$0x1] }
 0x199   : > { %1422 = vrot.lane.b32.xlu0 %v3383_v58, %s4012_s18 }
 0x19a   : > { %v1234_v20 = vpack.c.b16 %v3407_v28, %v3407_v28 }
 0x19b   : > { %v878_v5 = vpop.permute.xlu0 %877 }
 0x19c   : > { %1424 = vrot.lane.b32.xlu1 %v3390_v11, %s4012_s18  ;;  %v1143_v14 = vsel %vm1141_vm12, %v1126_v61, %v878_v5  ;;  %v1243_v42 = vshrl.u32 %v1234_v20, 16 }
 0x19d   : > { %1450 = vrot.lane.b32.xlu2 %v3394_v32, %s4013_s20  ;;  %v3403_v47 = vsel %vm1158_vm13, %v1143_v14, %v895_v3  ;;  %v1246_v3 = vshll.u32 %v1234_v20, 16  ;;  %v1236_v14 = vpack.c.b16 %v3449_v24, %v3449_v24 }
 0x19e   : > { %v880_v45 = vpop.permute.xlu1 %879 }
 0x19f   : > { %v1145_v62 = vsel %vm1141_vm12, %v3300_v8, %v880_v45  ;;  %v907_v31 = vpop.permute.xlu2 %906  ;;  %v418_v8 = vld [vmem:[%s3209_s19 + $0x44] sm:$0x1]  ;;  %v1267_v45 = vshll.u32 %v1237_v36, 16 }
 0x1a0   : > { %v1453_v0 = vunpack.c.l.b16 %v418_v8 }
 0x1a1   : > { %1446 = vrot.lane.b32.xlu0 %v3324_v51, %s4013_s20  ;;  %v3471_v55 = vor.u32 %v1267_v45, %v1266_v39  ;;  %v402_v45 = vld [vmem:[%s3209_s19 + $0x4] sm:$0x1] }
 0x1a3   : > { %v884_v18 = vpop.permute.xlu0 %883 }
 0x1a4   : > { %1448 = vrot.lane.b32.xlu1 %v3307_v10, %s4013_s20  ;;  %v1149_v7 = vsel %vm1141_vm12, %v1132_v56, %v884_v18  ;;  %v3434_v56 = vpack.c.b16 %v1453_v0, %v3352_v4 }
 0x1a5   : > { %1467 = vrot.lane.b32.xlu2 %v3361_v6, %s4014_s30  ;;  %v3420_v61 = vsel %vm1158_vm13, %v1149_v7, %v901_v54 }
 0x1a6   : > { %v886_v12 = vpop.permute.xlu1 %885  ;;  %v1474_v15 = vshll.u32 %v3434_v56, 16  ;;  %v1472_v54 = vshrl.u32 %v3434_v56, 16 }
 0x1a7   : > { %v1151_v49 = vsel %vm1141_vm12, %v3319_v2, %v886_v12  ;;  %v916_v25 = vpop.permute.xlu2 %915  ;;  %v1245_v2 = vrot.slane %v1243_v42, 7  ;;  %v1257_v12 = vshrl.u32 %v1236_v14, 16  ;;  %v1253_v42 = vshll.u32 %v1235_v50, 16 }
 0x1a8   : > { %v1476_v5 = vrot.slane %v1474_v15, 1 }
 0x1a9   : > { %1463 = vrot.lane.b32.xlu0 %v3316_v35, %s4014_s30  ;;  %v1248_v17 = vor.u32 %v1246_v3, %v1245_v2  ;;  %v1495_v3 = vunpack.c.l.b16 %v419_v23  ;;  %v408_v23 = vld [vmem:[%s3209_s19 + $0x1c] sm:$0x1] }
 0x1aa   : > { %v3467_v8 = vor.u32 %v1476_v5, %v1472_v54 }
 0x1ab   : > { %v890_v13 = vpop.permute.xlu0 %889 }
 0x1ac   : > { %1465 = vrot.lane.b32.xlu1 %v3328_v48, %s4014_s30  ;;  %v1155_v29 = vsel %vm1141_vm12, %v1138_v44, %v890_v13 }
 0x1ad   : > { %1488 = vrot.lane.b32.xlu2 %v3383_v58, %s2393_s29  ;;  %v3444_v33 = vsel %vm1158_vm13, %v1155_v29, %v907_v31  ;;  %v1250_v31 = vshrl.u32 %v1235_v50, 16  ;;  %v1260_v29 = vshll.u32 %v1236_v14, 16 }
 0x1ae   : > { %v892_v46 = vpop.permute.xlu1 %891 }
 0x1af   : > { %v1157_v21 = vsel %vm1141_vm12, %v3341_v43, %v892_v46  ;;  %v922_v4 = vpop.permute.xlu2 %921  ;;  %v1252_v0 = vrot.slane %v1250_v31, 7 }
 0x1b1   : > { %1469 = vrot.lane.b32.xlu0 %v3434_v56, %s4014_s30  ;;  %v3479_v2 = vor.u32 %v1253_v42, %v1252_v0 }
 0x1b3   : > { %v897_v44 = vpop.permute.xlu0 %896 }
 0x1b4   : > { %1486 = vrot.lane.b32.xlu1 %v3350_v40, %s2393_s29  ;;  %v1162_v43 = vsel %vm1158_vm13, %v1145_v62, %v897_v44 }
 0x1b5   : > { %1298 = vrot.lane.b32.xlu2 %v1248_v17, %s4010_s13  ;;  %v3463_v18 = vsel %vm1175_vm14, %v1162_v43, %v916_v25 }
 0x1b6   : > { %v899_v7 = vpop.permute.xlu1 %898 }
 0x1b7   : > { %v1164_v20 = vsel %vm1158_vm13, %v3367_v63, %v899_v7  ;;  %v928_v62 = vpop.permute.xlu2 %927  ;;  %v1259_v63 = vrot.slane %v1257_v12, 7  ;;  %v1322_v7 = vunpack.c.l.b16 %v402_v45  ;;  %v406_v12 = vld [vmem:[%s3209_s19 + $0x14] sm:$0x1] }
 0x1b9   : > { %1490 = vrot.lane.b32.xlu0 %v3390_v11, %s2393_s29  ;;  %v3488_v17 = vor.u32 %v1260_v29, %v1259_v63  ;;  %v1330_v42 = vpack.c.b16 %v1322_v7, %v3407_v28  ;;  %v1325_v63 = vunpack.c.l.b16 %v408_v23 }
 0x1bb   : > { %v903_v13 = vpop.permute.xlu0 %902 }
 0x1bc   : > { %1492 = vrot.lane.b32.xlu1 %v3467_v8, %s2393_s29  ;;  %v1168_v25 = vsel %vm1158_vm13, %v1151_v49, %v903_v13  ;;  %v1496_v49 = vpack.c.b16 %v1495_v3, %v1495_v3 }
 0x1bd   : > { %1304 = vrot.lane.b32.xlu2 %v3471_v55, %s4010_s13  ;;  %v3482_v36 = vsel %vm1175_vm14, %v1168_v25, %v922_v4 }
 0x1be   : > { %v905_v27 = vpop.permute.xlu1 %904  ;;  %v1498_v44 = vshrl.u32 %v1496_v49, 16  ;;  %v1501_v39 = vshll.u32 %v1496_v49, 16 }
 0x1bf   : > { %v1170_v46 = vsel %vm1158_vm13, %v3386_v52, %v905_v27  ;;  %v3486_v15 = vpop.permute.xlu2 %1206  ;;  %v1323_v52 = vunpack.c.l.b16 %v404_v60  ;;  %v3543_v60 = vpack.c.b16 %v1325_v63, %v3427_v16 }
 0x1c1   : > { %1300 = vrot.lane.b32.xlu0 %v3479_v2, %s4010_s13 }
 0x1c3   : > { %v909_v50 = vpop.permute.xlu0 %908 }
 0x1c4   : > { %1302 = vrot.lane.b32.xlu1 %v3488_v17, %s4010_s13  ;;  %v1174_v4 = vsel %vm1158_vm13, %v1157_v21, %v909_v50  ;;  %v1500_v21 = vrot.slane %v1498_v44, 7 }
 0x1c5   : > { %1516 = vrot.lane.b32.xlu2 %v3394_v32, %s2394_s9  ;;  %v3499_v43 = vsel %vm1175_vm14, %v1174_v4, %v928_v62  ;;  %v3511_v32 = vpack.c.b16 %v1323_v52, %v3440_v37 }
 0x1c6   : > { %v914_v54 = vpop.permute.xlu1 %913  ;;  %v1503_v62 = vor.u32 %v1501_v39, %v1500_v21 }
 0x1c7   : > { %v3503_v5 = vsel %vm1175_vm14, %v3403_v47, %v914_v54  ;;  %v3505_v14 = vpop.permute.xlu2 %1212  ;;  %v1364_v52 = vshll.u32 %v3511_v32, 16  ;;  %v1362_v45 = vshrl.u32 %v3511_v32, 16 }
 0x1c9   : > { %1512 = vrot.lane.b32.xlu0 %v3324_v51, %s2394_s9 }
 0x1cb   : > { %v918_v31 = vpop.permute.xlu0 %917 }
 0x1cc   : > { %1514 = vrot.lane.b32.xlu1 %v3307_v10, %s2394_s9  ;;  %v3516_v47 = vsel %vm1175_vm14, %v1164_v20, %v918_v31  ;;  %v1324_v10 = vunpack.c.l.b16 %v406_v12  ;;  %v420_v20 = vld [vmem:[%s3209_s19 + $0x4c] sm:$0x1]  ;;  %v1366_v31 = vrot.slane %v1364_v52, 1 }
 0x1cd   : > { %1340 = vrot.lane.b32.xlu2 %v3511_v32, %s4011_s12 }
 0x1ce   : > { %v920_v51 = vpop.permute.xlu1 %919  ;;  %v3534_v29 = vpack.c.b16 %v1324_v10, %v3449_v24 }
 0x1cf   : > { %v3523_v0 = vsel %vm1175_vm14, %v3420_v61, %v920_v51  ;;  %v1307_v37 = vpop.permute.xlu2 %1306  ;;  %v1521_v61 = vunpack.c.l.b16 %v420_v20 }
 0x1d0   : > { %v1371_v24 = vshll.u32 %v3534_v29, 16 }
 0x1d1   : > { %1518 = vrot.lane.b32.xlu0 %v1503_v62, %s2394_s9  ;;  %v1378_v62 = vshll.u32 %v3543_v60, 16 }
 0x1d2   : > { %v1373_v4 = vrot.slane %v1371_v24, 1  ;;  %v1573_v24 = vsel %vm929_vm0, %v2897_v26, %v3505_v14 }
 0x1d3   : > { %v924_v13 = vpop.permute.xlu0 %923  ;;  %v1380_v23 = vrot.slane %v1378_v62, 1 }
 0x1d4   : > { %1338 = vrot.lane.b32.xlu1 %v1330_v42, %s4011_s12  ;;  %v3531_v25 = vsel %vm1175_vm14, %v1170_v46, %v924_v13  ;;  %v1522_v46 = vpack.c.b16 %v1521_v61, %v1495_v3  ;;  %v1355_v3 = vshrl.u32 %v1330_v42, 16 }
 0x1d5   : > { %1531 = vrot.lane.b32.xlu2 %v3328_v48, %s2395_s16  ;;  %v1357_v48 = vshll.u32 %v1330_v42, 16  ;;  %v1367_v42 = vor.u32 %v1366_v31, %v1362_v45 }
 0x1d6   : > { %v926_v28 = vpop.permute.xlu1 %925 }
 0x1d7   : > { %v3540_v27 = vsel %vm1175_vm14, %v3444_v33, %v926_v28  ;;  %v1313_v49 = vpop.permute.xlu2 %1312  ;;  %v1369_v33 = vshrl.u32 %v3534_v29, 16  ;;  %v1359_v54 = vrot.slane %v1357_v48, 1  ;;  %v1542_v28 = vshll.u32 %v1522_v46, 16 }
 0x1d9   : > { %1342 = vrot.lane.b32.xlu0 %v3534_v29, %s4011_s12  ;;  %v3559_v21 = vor.u32 %v1373_v4, %v1369_v33  ;;  %v1360_v7 = vor.u32 %v1359_v54, %v1355_v3  ;;  %v1544_v4 = vrot.slane %v1542_v28, 1 }
 0x1db   : > { %v3548_v50 = vpop.permute.xlu0 %1202 }
 0x1dc   : > { %1344 = vrot.lane.b32.xlu1 %v3543_v60, %s4011_s12  ;;  %s2164_s12 = sshll.u32 %s2369_s24, 3 }
 0x1dd   : > { %1537 = vrot.lane.b32.xlu2 %v1522_v46, %s2395_s16 }
 0x1de   : > { %v3554_v44 = vpop.permute.xlu1 %1204 }
 0x1df   : > { %v1351_v16 = vpop.permute.xlu2 %1350 }
 0x1e1   : > { %1533 = vrot.lane.b32.xlu0 %v3361_v6, %s2395_s16 }
 0x1e3   : > { %v3561_v39 = vpop.permute.xlu0 %1208 }
 0x1e4   : > { %1535 = vrot.lane.b32.xlu1 %v3434_v56, %s2395_s16  ;;  %v1376_v56 = vshrl.u32 %v3543_v60, 16 }
 0x1e5   : > { %1414 = vrot.lane.b32.xlu2 %v3559_v21, %s4012_s18 }
 0x1e6   : > { %v1211_v51 = vpop.permute.xlu1 %1210  ;;  %v3575_v13 = vor.u32 %v1380_v23, %v1376_v56  ;;  %v1563_v56 = vsel %vm929_vm0, %v2815_v41, %v3548_v50  ;;  %v1569_v41 = vsel %vm929_vm0, %v2849_v9, %v3561_v39 }
 0x1e7   : > { %v1571_v6 = vsel %vm929_vm0, %v2888_v38, %v1211_v51  ;;  %v1421_v12 = vpop.permute.xlu2 %1420 }
 0x1e8   : > { %v1587_v10 = vsel %vm954_vm1, %v1571_v6, %v1307_v37 }
 0x1e9   : > { %1410 = vrot.lane.b32.xlu0 %v1360_v7, %s4012_s18 }
 0x1eb   : > { %v1215_v20 = vpop.permute.xlu0 %1214 }
 0x1ec   : > { %1412 = vrot.lane.b32.xlu1 %v1367_v42, %s4012_s18  ;;  %v1575_v33 = vsel %vm929_vm0, %v3014_v57, %v1215_v20 }
 0x1ed   : > { %1556 = vrot.lane.b32.xlu2 %v3390_v11, %s2396_s17  ;;  %v1540_v11 = vshrl.u32 %v1522_v46, 16 }
 0x1ee   : > { %v1217_v63 = vpop.permute.xlu1 %1216 }
 0x1ef   : > { %v1577_v38 = vsel %vm929_vm0, %v3273_v30, %v1217_v63  ;;  %v1445_v61 = vpop.permute.xlu2 %1444  ;;  %v1545_v54 = vor.u32 %v1544_v4, %v1540_v11 }
 0x1f0   : > { %v1593_v37 = vsel %vm954_vm1, %v1577_v38, %v1313_v49 }
 0x1f1   : > { %1416 = vrot.lane.b32.xlu0 %v3575_v13, %s4012_s18  ;;  %s2165_s18 = sshll.u32 %s2373_s25, 6  ;;  %s2311_s25 = scalar_lea.hbm %s3902_s6, 512 }
 0x1f3   : > { %v1309_v48 = vpop.permute.xlu0 %1308 }
 0x1f4   : > { %1554 = vrot.lane.b32.xlu1 %v3383_v58, %s2396_s17  ;;  %v1589_v30 = vsel %vm954_vm1, %v1573_v24, %v1309_v48 }
 0x1f5   : > { %1436 = vrot.lane.b32.xlu2 %v3479_v2, %s4013_s20 }
 0x1f6   : > { %v1311_v49 = vpop.permute.xlu1 %1310 }
 0x1f7   : > { %v1591_v52 = vsel %vm954_vm1, %v1575_v33, %v1311_v49  ;;  %v1451_v3 = vpop.permute.xlu2 %1450 }
 0x1f8   : > { %v1607_v26 = vsel %vm971_vm2, %v1591_v52, %v1351_v16 }
 0x1f9   : > { %1558 = vrot.lane.b32.xlu0 %v3467_v8, %s2396_s17 }
 0x1fb   : > { %v1347_v57 = vpop.permute.xlu0 %1346 }
 0x1fc   : > { %1560 = vrot.lane.b32.xlu1 %v1545_v54, %s2396_s17  ;;  %v1603_v58 = vsel %vm971_vm2, %v1587_v10, %v1347_v57 }
 0x1fd   : > { %1442 = vrot.lane.b32.xlu2 %v3291_v1, %s4013_s20 }
 0x1fe   : > { %v1349_v14 = vpop.permute.xlu1 %1348 }
 0x1ff   : > { %v1605_v2 = vsel %vm971_vm2, %v1589_v30, %v1349_v14  ;;  %v1468_v46 = vpop.permute.xlu2 %1467 }
 0x200   : > { %v3604_v45 = vsel %vm988_vm3, %v1605_v2, %v1421_v12 }
 0x201   : > { %1438 = vrot.lane.b32.xlu0 %v3488_v17, %s4013_s20 }
 0x203   : > { %v1353_v16 = vpop.permute.xlu0 %1352 }
 0x204   : > { %1440 = vrot.lane.b32.xlu1 %v3471_v55, %s4013_s20  ;;  %v1609_v8 = vsel %vm971_vm2, %v1593_v37, %v1353_v16  ;;  %s1985_s20 = sadd.s32 %s2165_s18, %s2164_s12 }
 0x205   : > { %1459 = vrot.lane.b32.xlu2 %v3543_v60, %s4014_s30 }
 0x206   : > { %v1419_v31 = vpop.permute.xlu1 %1418 }
 0x207   : > { %v1619_v7 = vsel %vm988_vm3, %v1603_v58, %v1419_v31  ;;  %v3614_v62 = vpop.permute.xlu2 %1488 }
 0x208   : > { %v1635_v51 = vsel %vm1005_vm4, %v1619_v7, %v1445_v61 }
 0x209   : > { %1455 = vrot.lane.b32.xlu0 %v3511_v32, %s4014_s30 }
 0x20b   : > { %v1423_v6 = vpop.permute.xlu0 %1422 }
 0x20c   : > { %1457 = vrot.lane.b32.xlu1 %v3534_v29, %s4014_s30  ;;  %v1623_v12 = vsel %vm988_vm3, %v1607_v26, %v1423_v6 }
 0x20d   : > { %1480 = vrot.lane.b32.xlu2 %v3559_v21, %s2393_s29 }
 0x20e   : > { %v1425_v10 = vpop.permute.xlu1 %1424 }
 0x20f   : > { %v1625_v23 = vsel %vm988_vm3, %v1609_v8, %v1425_v10  ;;  %v1299_v20 = vpop.permute.xlu2 %1298 }
 0x210   : > { %v1579_v63 = vsel %vm954_vm1, %v1563_v56, %v1299_v20  ;;  %v1641_v32 = vsel %vm1005_vm4, %v1625_v23, %v1451_v3 }
 0x211   : > { %1461 = vrot.lane.b32.xlu0 %v3337_v53, %s4014_s30  ;;  %s2166_s30 = sshll.u32 %s1985_s20, 2 }
 0x213   : > { %v1447_v38 = vpop.permute.xlu0 %1446 }
 0x214   : > { %1478 = vrot.lane.b32.xlu1 %v1367_v42, %s2393_s29 }
 0x215   : > { %1504 = vrot.lane.b32.xlu2 %v3488_v17, %s2394_s9 }
 0x216   : > { %v1449_v61 = vpop.permute.xlu1 %1448 }
 0x217   : > { %v1639_v50 = vsel %vm1005_vm4, %v1623_v12, %v1449_v61  ;;  %v1305_v28 = vpop.permute.xlu2 %1304 }
 0x218   : > { %v1585_v37 = vsel %vm954_vm1, %v1569_v41, %v1305_v28  ;;  %v3641_v24 = vsel %vm1022_vm5, %v1639_v50, %v1468_v46 }
 0x219   : > { %1482 = vrot.lane.b32.xlu0 %v3575_v13, %s2393_s29 }
 0x21b   : > { %v1464_v42 = vpop.permute.xlu0 %1463 }
 0x21c   : > { %1484 = vrot.lane.b32.xlu1 %v3371_v34, %s2393_s29  ;;  %v1651_v17 = vsel %vm1022_vm5, %v1635_v51, %v1464_v42  ;;  %s3930_s29 = smov 64  }
 0x21d   : > { %1510 = vrot.lane.b32.xlu2 %v3314_v19, %s2394_s9 }
 0x21e   : > { %v1466_v9 = vpop.permute.xlu1 %1465 }
 0x21f   : > { %v3650_v39 = vpop.permute.xlu2 %1516 }
 0x221   : > { %1506 = vrot.lane.b32.xlu0 %v3471_v55, %s2394_s9 }
 0x223   : > { %v1470_v48 = vpop.permute.xlu0 %1469 }
 0x224   : > { %1508 = vrot.lane.b32.xlu1 %v3291_v1, %s2394_s9  ;;  %v3657_v33 = vsel %vm1022_vm5, %v1641_v32, %v1470_v48  ;;  %s1987_s9 = scalar_lea.hbm %s3902_s6, %s2166_s30 }
 0x225   : > { %1527 = vrot.lane.b32.xlu2 %v3337_v53, %s2395_s16  ;;  %v1565_v53 = vsel %vm929_vm0, %v2857_v59, %v3554_v44 }
 0x226   : > { %v1487_v30 = vpop.permute.xlu1 %1486 }
 0x227   : > { %v1341_v11 = vpop.permute.xlu2 %1340 }
 0x229   : > { %1523 = vrot.lane.b32.xlu0 %v3534_v29, %s2395_s16 }
 0x22b   : > { %v1491_v19 = vpop.permute.xlu0 %1490 }
 0x22c   : > { %1525 = vrot.lane.b32.xlu1 %v3543_v60, %s2395_s16 }
 0x22d   : > { %1548 = vrot.lane.b32.xlu2 %v3575_v13, %s2396_s17  ;;  %v1567_v13 = vsel %vm929_vm0, %v2871_v22, %v3486_v15  ;;  %vm1786_vm0 = vcmask 523264  }
 0x22e   : > { %v1493_v55 = vpop.permute.xlu1 %1492 }
 0x22f   : > { %v1532_v1 = vpop.permute.xlu2 %1531  ;;  %v1673_v48 = vsel %vm1039_vm6, %v3657_v33, %v1493_v55 }
 0x231   : > { %1529 = vrot.lane.b32.xlu0 %v3316_v35, %s2395_s16 }
 0x233   : > { %v1301_v4 = vpop.permute.xlu0 %1300 }
 0x234   : > { %1546 = vrot.lane.b32.xlu1 %v3559_v21, %s2396_s17  ;;  %v1581_v29 = vsel %vm954_vm1, %v1565_v53, %v1301_v4 }
 0x235   : > { %v3676_v60 = vsel %vm971_vm2, %v1581_v29, %v1341_v11 }
 0x236   : > { %v1303_v49 = vpop.permute.xlu1 %1302 }
 0x237   : > { %v1583_v35 = vsel %vm954_vm1, %v1567_v13, %v1303_v49  ;;  %v1538_v44 = vpop.permute.xlu2 %1537  ;;  %vm1878_vm1 = vcmask 883712  }
 0x239   : > { %1550 = vrot.lane.b32.xlu0 %v3371_v34, %s2396_s17  ;;  %v1637_v34 = vsel %vm1005_vm4, %v3604_v45, %v1447_v38 }
 0x23a   : > { %v1653_v14 = vsel %vm1022_vm5, %v1637_v34, %v1466_v9 }
 0x23b   : > { %v1513_v59 = vpop.permute.xlu0 %1512  ;;  %v1669_v46 = vsel %vm1039_vm6, %v1653_v14, %v3614_v62 }
 0x23c   : > { %1552 = vrot.lane.b32.xlu1 %v3350_v40, %s2396_s17  ;;  %s326_s17 = sand.u32 1, %s2361_s22  }
 0x23d   : > { %s2123_s19 = sshll.u32 %s326_s17, 5  ;;  %s1974_s12 = scalar_lea.sflag [#allocation3], %s326_s17 }
 0x23e   : > { %v1515_v21 = vpop.permute.xlu1 %1514  ;;  %s3829_s13 = scalar_lea.vmem [#allocation2], %s2123_s19  ;;  %s1990_s19 = sshll.u32 %s1987_s9, 4  ;;  %s1991_s19 = int_to_ptr.hbm [resolvable:$true] %s1990_s19 }
 0x23f   : > { %v1415_v3 = vpop.permute.xlu2 %1414  ;;  %v1685_v16 = vsel %vm1056_vm7, %v1669_v46, %v1515_v21  ;;  %s1988_s16 = sshll.u32 %s3829_s13, 4  ;;  %s2305_s18 = sshra.s32 %s1991_s19, 4  ;;  %s1989_s16 = int_to_ptr.vmem [resolvable:$true] %s1988_s16  ;;  %s2306_s18 = int_to_ptr.hbm [resolvable:$true] %s2305_s18 }
 0x240   : > { %s2307_s20 = scalar_lea.hbm %s2306_s18, 32  ;;  %p2312_p6 = scmp.lt.s32.totalorder %s2306_s18, %s3902_s6 }
 0x241   : > { %p2308_p2 = scmp.ne.s32.totalorder %s2306_s18, %s2307_s20  ;;  %p2313_p7 = scmp.lt.s32.totalorder %s2311_s25, %s2307_s20 }
 0x243   : > { %v1519_v52 = vpop.permute.xlu0 %1518  ;;  %p2309_p4 = pnand %p2308_p2, %p2489_p3  ;;  %p2314_p9 = por %p2313_p7, %p2312_p6 }
 0x244   : > { %v1689_v53 = vsel %vm1056_vm7, %v1673_v48, %v1519_v52 }
 0x245   : > { %v1705_v49 = vsel %vm1073_vm8, %v1689_v53, %v1538_v44  ;;  %v2173_v53 = vld [vmem:[%s3899_s3 + $0x18] sm:$0xff]  ;;  %p2310_p5 = pneg %p2309_p4 }
 0x246   : > { %v1339_v54 = vpop.permute.xlu1 %1338 }
 0x247   : > { %v1595_v26 = vsel %vm971_vm2, %v1579_v63, %v1339_v54  ;;  %v1557_v2 = vpop.permute.xlu2 %1556  ;;  %v1667_v63 = vsel %vm1039_vm6, %v1651_v17, %v1487_v30  ;;  %p2315_p10 = pnand %p2314_p9, %p2310_p5 }
 0x248   : > { %v1683_v32 = vsel %vm1056_vm7, %v1667_v63, %v1513_v59 }
 0x249   : > { %v1699_v50 = vsel %vm1073_vm8, %v1683_v32, %v1532_v1  ;;  %v2175_v32 = vld [vmem:[%s3899_s3 + $0x28] sm:$0xff] }
 0x24b   : > { %v1343_v57 = vpop.permute.xlu0 %1342 }
 0x24c   : > { %v1599_v22 = vsel %vm971_vm2, %v1583_v35, %v1343_v57 }
 0x24d   : > { %v3689_v15 = vsel %vm988_vm3, %v1599_v22, %v1415_v3 }
 0x24e   : > { %v1345_v58 = vpop.permute.xlu1 %1344 }
 0x24f   : > { %v1601_v40 = vsel %vm971_vm2, %v1585_v37, %v1345_v58  ;;  %v3700_v10 = vpop.permute.xlu2 %1436  ;;  %v1671_v37 = vsel %vm1039_vm6, %v3641_v24, %v1491_v19  ;;  %vm1964_vm2 = vcmask 60416  }
 0x250   : > { %v1687_v17 = vsel %vm1056_vm7, %v1671_v37, %v3650_v39 }
 0x253   : > { %v1534_v8 = vpop.permute.xlu0 %1533 }
 0x254   : > { %v1701_v31 = vsel %vm1073_vm8, %v1685_v16, %v1534_v8 }
 0x255   : > { %v1717_v7 = vsel %vm1090_vm9, %v1701_v31, %v1557_v2 }
 0x256   : > { %v1754_v51 = vshll.u32 %v1717_v7, 16  ;;  %v1536_v6 = vpop.permute.xlu1 %1535  ;;  %v1752_v12 = vshrl.u32 %v1717_v7, 16 }
 0x257   : > { %v3708_v61 = vpop.permute.xlu2 %1442  ;;  %v1703_v4 = vsel %vm1073_vm8, %v1687_v17, %v1536_v6  ;;  %v2176_v6 = vld [vmem:[%s3899_s3 + $0x30] sm:$0x30] }
 0x258   : > { %v1756_v45 = vrot.slane %v1754_v51, 1  ;;  %v2157_v51 = vld [vmem:[%s3899_s3 + $0x30] sm:$0xf] }
 0x25a   : > { %v1757_v56 = vor.u32 %v1756_v45, %v1752_v12  ;;  %v2158_v12 = vor.u32 %v2176_v6, %v2157_v51 }
 0x25b   : > { %v1411_v23 = vpop.permute.xlu0 %1410 }
 0x25c   : > { %v3703_v20 = vsel %vm988_vm3, %v1595_v26, %v1411_v23  ;;  %1780 = vrot.lane.b32.xlu0 %v1757_v56, %s3930_s29  ;;  %v1893_v23 = vsel %vm1891_vm15, %v2158_v12, 0 }
 0x25d   : > { %2178 = vmatpush.bf16.msra.mxu2 %v1893_v23  ;;  %2179 = vmatpush.bf16.msra.mxu3 %v1893_v23 }
 0x25e   : > { %v1413_v62 = vpop.permute.xlu1 %1412  ;;  %1896 = vmatpush.bf16.msra.mxu0 %v1893_v23  ;;  %2177 = vmatpush.bf16.msra.mxu1 %v1893_v23 }
 0x25f   : > { %v3723_v29 = vpop.permute.xlu2 %1459  ;;  %v1613_v45 = vsel %vm988_vm3, %v3676_v60, %v1413_v62  ;;  %v2174_v62 = vld [vmem:[%s3899_s3 + $0x20] sm:$0xff] }
 0x261   : > { %2181 = vmatpush.bf16.msra.mxu2 %v2175_v32  ;;  %2182 = vmatpush.bf16.msra.mxu3 %v2175_v32 }
 0x262   : > { %1897 = vmatpush.bf16.msra.mxu0 %v2175_v32  ;;  %2180 = vmatpush.bf16.msra.mxu1 %v2175_v32 }
 0x263   : > { %v1417_v38 = vpop.permute.xlu0 %1416 }
 0x264   : > { %v3711_v41 = vsel %vm988_vm3, %v1601_v40, %v1417_v38 }
 0x265   : > { %2184 = vmatpush.bf16.msra.mxu2 %v2174_v62  ;;  %2185 = vmatpush.bf16.msra.mxu3 %v2174_v62 }
 0x266   : > { %v1555_v28 = vpop.permute.xlu1 %1554  ;;  %1898 = vmatpush.bf16.msra.mxu0 %v2174_v62  ;;  %2183 = vmatpush.bf16.msra.mxu1 %v2174_v62 }
 0x267   : > { %v1715_v42 = vsel %vm1090_vm9, %v1699_v50, %v1555_v28  ;;  %v1481_v57 = vpop.permute.xlu2 %1480 }
 0x268   : > { %v1748_v9 = vshll.u32 %v1715_v42, 16  ;;  %v1746_v30 = vshrl.u32 %v1715_v42, 16 }
 0x269   : > { %2187 = vmatpush.bf16.msra.mxu2 %v2173_v53  ;;  %2188 = vmatpush.bf16.msra.mxu3 %v2173_v53 }
 0x26a   : > { %v1750_v11 = vrot.slane %v1748_v9, 1  ;;  %v1627_v9 = vsel %vm1005_vm4, %v3703_v20, %v3700_v10  ;;  %1899 = vmatpush.bf16.msra.mxu0 %v2173_v53  ;;  %2186 = vmatpush.bf16.msra.mxu1 %v2173_v53 }
 0x26b   : > { %v1559_v1 = vpop.permute.xlu0 %1558 }
 0x26c   : > { %v1751_v13 = vor.u32 %v1750_v11, %v1746_v30  ;;  %v1719_v24 = vsel %vm1090_vm9, %v1703_v4, %v1559_v1 }
 0x26d   : > { %v1760_v19 = vshll.u32 %v1719_v24, 16  ;;  %v1758_v39 = vshrl.u32 %v1719_v24, 16 }
 0x26e   : > { %v1561_v35 = vpop.permute.xlu1 %1560  ;;  %1778 = vrot.lane.b32.xlu2 %v1751_v13, %s3930_s29 }
 0x26f   : > { %v1762_v33 = vrot.slane %v1760_v19, 1  ;;  %v1721_v55 = vsel %vm1090_vm9, %v1705_v49, %v1561_v35  ;;  %v1505_v58 = vpop.permute.xlu2 %1504 }
 0x270   : > { %v1766_v59 = vshll.u32 %v1721_v55, 16  ;;  %v1764_v52 = vshrl.u32 %v1721_v55, 16 }
 0x271   : > { %v1763_v21 = vor.u32 %v1762_v33, %v1758_v39  ;;  %v1633_v33 = vsel %vm1005_vm4, %v3711_v41, %v3708_v61  ;;  %v2171_v61 = vld [vmem:[%s3899_s3 + $0x8] sm:$0xff] }
 0x272   : > { %v1768_v3 = vrot.slane %v1766_v59, 1 }
 0x273   : > { %1782 = vrot.lane.b32.xlu1 %v1763_v21, %s3930_s29  ;;  %v1439_v54 = vpop.permute.xlu0 %1438 }
 0x274   : > { %v1769_v26 = vor.u32 %v1768_v3, %v1764_v52  ;;  %v1629_v56 = vsel %vm1005_vm4, %v1613_v45, %v1439_v54 }
 0x276   : > { %v1441_v22 = vpop.permute.xlu1 %1440  ;;  %1784 = vrot.lane.b32.xlu2 %v1769_v26, %s3930_s29 }
 0x277   : > { %v3733_v2 = vpop.permute.xlu2 %1510  ;;  %v1631_v4 = vsel %vm1005_vm4, %v3689_v15, %v1441_v22 }
 0x278   : > { %v1647_v19 = vsel %vm1022_vm5, %v1631_v4, %v3723_v29  ;;  %v2172_v29 = vld [vmem:[%s3899_s3 + $0x10] sm:$0xff] }
 0x279   : > { %2190 = vmatpush.bf16.msra.mxu2 %v2172_v29  ;;  %2191 = vmatpush.bf16.msra.mxu3 %v2172_v29 }
 0x27a   : > { %1900 = vmatpush.bf16.msra.mxu0 %v2172_v29  ;;  %2189 = vmatpush.bf16.msra.mxu1 %v2172_v29 }
 0x27b   : > { %v1456_v44 = vpop.permute.xlu0 %1455 }
 0x27c   : > { %v1643_v48 = vsel %vm1022_vm5, %v1627_v9, %v1456_v44 }
 0x27d   : > { %2193 = vmatpush.bf16.msra.mxu2 %v2171_v61  ;;  %2194 = vmatpush.bf16.msra.mxu3 %v2171_v61 }
 0x27e   : > { %v1458_v34 = vpop.permute.xlu1 %1457  ;;  %1901 = vmatpush.bf16.msra.mxu0 %v2171_v61  ;;  %2192 = vmatpush.bf16.msra.mxu1 %v2171_v61 }
 0x27f   : > { %v3735_v31 = vpop.permute.xlu2 %1527  ;;  %v1645_v63 = vsel %vm1022_vm5, %v1629_v56, %v1458_v34 }
 0x280   : > { %v1661_v50 = vsel %vm1039_vm6, %v1645_v63, %v1481_v57 }
 0x283   : > { %v3731_v14 = vpop.permute.xlu0 %1461 }
 0x284   : > { %v1649_v21 = vsel %vm1022_vm5, %v1633_v33, %v3731_v14 }
 0x286   : > { %v1479_v40 = vpop.permute.xlu1 %1478 }
 0x287   : > { %v1549_v28 = vpop.permute.xlu2 %1548  ;;  %v1659_v11 = vsel %vm1039_vm6, %v1643_v48, %v1479_v40 }
 0x288   : > { %v1675_v10 = vsel %vm1056_vm7, %v1659_v11, %v1505_v58 }
 0x28b   : > { %v1483_v46 = vpop.permute.xlu0 %1482 }
 0x28c   : > { %v1663_v39 = vsel %vm1039_vm6, %v1647_v19, %v1483_v46 }
 0x28e   : > { %v1485_v16 = vpop.permute.xlu1 %1484 }
 0x28f   : > { %v1665_v52 = vsel %vm1039_vm6, %v1649_v21, %v1485_v16 }
 0x290   : > { %v1681_v44 = vsel %vm1056_vm7, %v1665_v52, %v3733_v2 }
 0x293   : > { %v1507_v8 = vpop.permute.xlu0 %1506 }
 0x294   : > { %v1677_v37 = vsel %vm1056_vm7, %v1661_v50, %v1507_v8 }
 0x296   : > { %v1509_v7 = vpop.permute.xlu1 %1508 }
 0x297   : > { %v1679_v55 = vsel %vm1056_vm7, %v1663_v39, %v1509_v7 }
 0x298   : > { %v1695_v41 = vsel %vm1073_vm8, %v1679_v55, %v3735_v31  ;;  %v2170_v31 = vld [vmem:[%s3899_s3] sm:$0xff] }
 0x299   : > { %2196 = vmatpush.bf16.msra.mxu2 %v2170_v31  ;;  %2197 = vmatpush.bf16.msra.mxu3 %v2170_v31 }
 0x29a   : > { %1902 = vmatpush.bf16.msra.mxu0 %v2170_v31  ;;  %2195 = vmatpush.bf16.msra.mxu1 %v2170_v31 }
 0x29b   : > { %v1524_v38 = vpop.permute.xlu0 %1523 }
 0x29c   : > { %v1691_v49 = vsel %vm1073_vm8, %v1675_v10, %v1524_v38  ;;  %v2290_v10 = vld [vmem:[%s3901_s5] ss:$0 sm:$0xff] }
 0x29e   : > { %v1526_v60 = vpop.permute.xlu1 %1525 }
 0x29f   : > { %v1693_v42 = vsel %vm1073_vm8, %v1677_v37, %v1526_v60 }
 0x2a0   : > { %v1709_v17 = vsel %vm1090_vm9, %v1693_v42, %v1549_v28 }
 0x2a1   : > { %v1730_v30 = vshll.u32 %v1709_v17, 16  ;;  %v1728_v1 = vshrl.u32 %v1709_v17, 16 }
 0x2a3   : > { %v1732_v13 = vrot.slane %v1730_v30, 1  ;;  %v1530_v24 = vpop.permute.xlu0 %1529 }
 0x2a4   : > { %v1697_v58 = vsel %vm1073_vm8, %v1681_v44, %v1530_v24 }
 0x2a5   : > { %v1733_v20 = vor.u32 %v1732_v13, %v1728_v1 }
 0x2a6   : > { %v1547_v35 = vpop.permute.xlu1 %1546 }
 0x2a7   : > { %v1707_v15 = vsel %vm1090_vm9, %v1691_v49, %v1547_v35  ;;  %1772 = vrot.lane.b32.xlu1 %v1733_v20, %s3930_s29 }
 0x2a8   : > { %v1724_v59 = vshll.u32 %v1707_v15, 16  ;;  %v1722_v3 = vshrl.u32 %v1707_v15, 16 }
 0x2aa   : > { %v1726_v54 = vrot.slane %v1724_v59, 1 }
 0x2ab   : > { %v1551_v26 = vpop.permute.xlu0 %1550 }
 0x2ac   : > { %v1727_v57 = vor.u32 %v1726_v54, %v1722_v3  ;;  %v1711_v22 = vsel %vm1090_vm9, %v1695_v41, %v1551_v26 }
 0x2ad   : > { %v1736_v34 = vshll.u32 %v1711_v22, 16  ;;  %v1734_v40 = vshrl.u32 %v1711_v22, 16 }
 0x2ae   : > { %v1553_v14 = vpop.permute.xlu1 %1552  ;;  %1770 = vrot.lane.b32.xlu0 %v1727_v57, %s3930_s29 }
 0x2af   : > { %v1738_v46 = vrot.slane %v1736_v34, 1  ;;  %v1713_v16 = vsel %vm1090_vm9, %v1697_v58, %v1553_v14 }
 0x2b0   : > { %v1742_v8 = vshll.u32 %v1713_v16, 16  ;;  %v1740_v7 = vshrl.u32 %v1713_v16, 16 }
 0x2b1   : > { %v1739_v2 = vor.u32 %v1738_v46, %v1734_v40 }
 0x2b2   : > { %v1744_v51 = vrot.slane %v1742_v8, 1 }
 0x2b3   : > { %1774 = vrot.lane.b32.xlu2 %v1739_v2, %s3930_s29 }
 0x2b4   : > { %v1745_v6 = vor.u32 %v1744_v51, %v1740_v7 }
 0x2b6   : > { %1776 = vrot.lane.b32.xlu0 %v1745_v6, %s3930_s29 }
 0x2c8   : > { %v1779_v12 = vpop.permute.xlu2 %1778 }
 0x2c9   : > { %v1796_v45 = vsel %vm1786_vm0, %v3482_v36, %v1779_v12 }
 0x2ca   : > { %v1829_v63 = vunpack.c.l.b16 %v1796_v45 }
 0x2ce   : > { %v1781_v56 = vpop.permute.xlu0 %1780 }
 0x2cf   : > { %v1798_v23 = vsel %vm1786_vm0, %v3531_v25, %v1781_v56 }
 0x2d0   : > { %v1830_v32 = vunpack.c.l.b16 %v1798_v23  ;;  %v1785_v50 = vpop.permute.xlu2 %1784 }
 0x2d1   : > { %v1802_v28 = vsel %vm1786_vm0, %v3499_v43, %v1785_v50 }
 0x2d2   : > { %v1835_v38 = vpack.c.b16 %v1830_v32, %v1829_v63  ;;  %v1832_v62 = vunpack.c.l.b16 %v1802_v28 }
 0x2d4   : > { %2161 = vmatmul.msk.bf16.vlgmr.msra.gmra.mxu2 %vm1878_vm1, %v1835_v38 }
 0x2e5   : > { %v1783_v37 = vpop.permute.xlu1 %1782 }
 0x2e6   : > { %v1800_v60 = vsel %vm1786_vm0, %v3540_v27, %v1783_v37 }
 0x2e7   : > { %v1831_v36 = vunpack.c.l.b16 %v1800_v60 }
 0x2e9   : > { %v1836_v42 = vpack.c.b16 %v1832_v62, %v1831_v36 }
 0x2eb   : > { %2162 = vmatmul.msk.bf16.vlgmr.msra.gmra.mxu3 %vm1878_vm1, %v1836_v42 }
 0x30d   : > { %v1775_v11 = vpop.permute.xlu2 %1774 }
 0x30e   : > { %v1792_v27 = vsel %vm1786_vm0, %v3516_v47, %v1775_v11 }
 0x319   : > { %v1773_v25 = vpop.permute.xlu1 %1772 }
 0x31a   : > { %v1790_v9 = vsel %vm1786_vm0, %v3463_v18, %v1773_v25  ;;  %v1827_v18 = vunpack.c.l.b16 %v1792_v27 }
 0x31b   : > { %v1826_v30 = vunpack.c.l.b16 %v1790_v9 }
 0x320   : > { %v1771_v17 = vpop.permute.xlu0 %1770 }
 0x321   : > { %v1788_v48 = vsel %vm1786_vm0, %v3503_v5, %v1771_v17  ;;  %v2289_v5 = vld [vmem:[%s3900_s4] ss:$0 sm:$0xff] }
 0x322   : > { %v1825_v43 = vunpack.c.l.b16 %v1788_v48 }
 0x324   : > { %v1833_v53 = vpack.c.b16 %v1826_v30, %v1825_v43 }
 0x326   : > { %2159 = vmatmul.msk.bf16.vlgmr.msra.gmra.mxu0 %vm1878_vm1, %v1833_v53 }
 0x328   : > { %v1777_v4 = vpop.permute.xlu0 %1776 }
 0x329   : > { %v1794_v1 = vsel %vm1786_vm0, %v3523_v0, %v1777_v4 }
 0x32a   : > { %v1828_v13 = vunpack.c.l.b16 %v1794_v1 }
 0x32c   : > { %v1834_v24 = vpack.c.b16 %v1828_v13, %v1827_v18 }
 0x32e   : > { %2160 = vmatmul.msk.bf16.vlgmr.msra.gmra.mxu1 %vm1878_vm1, %v1834_v24 }
 0x357   : > { %v1914_v20 = vpop.f32.mrf.mxu2 }
 0x358   : > { %v1932_v47 = vmul.f32 %v2289_v5, %v1914_v20 }
 0x35a   : > { %v1944_v19 = vadd.f32 %v2290_v10, %v1932_v47 }
 0x35c   : > { %v1952_v0 = vmax.f32 %v1944_v19, 0.0 }
 0x35e   : > { %v1960_v49 = vpack.c.bf16 %v1952_v0, %v1952_v0 }
 0x35f   : > { %v1916_v35 = vpop.f32.mrf.mxu2 }
 0x360   : > { %1969 = vst.msk [vmem:[%s3829_s13 + $0x10] sm:$0xf] %vm1964_vm2, %v1960_v49  ;;  %v1933_v39 = vmul.f32 %v2289_v5, %v1916_v35 }
 0x362   : > { %v1945_v15 = vadd.f32 %v2290_v10, %v1933_v39 }
 0x364   : > { %v1953_v33 = vmax.f32 %v1945_v15, 0.0 }
 0x366   : > { %v1961_v55 = vpack.c.bf16 %v1953_v33, %v1953_v33 }
 0x368   : > { %1970 = vst.msk [vmem:[%s3829_s13 + $0x14] sm:$0xf] %vm1964_vm2, %v1961_v55 }
 0x36e   : > { %v1919_v59 = vpop.f32.mrf.mxu3 }
 0x36f   : > { %v1934_v29 = vmul.f32 %v2289_v5, %v1919_v59 }
 0x371   : > { %v1946_v21 = vadd.f32 %v2290_v10, %v1934_v29 }
 0x373   : > { %v1954_v52 = vmax.f32 %v1946_v21, 0.0 }
 0x375   : > { %v1962_v3 = vpack.c.bf16 %v1954_v52, %v1954_v52 }
 0x376   : > { %v1921_v54 = vpop.f32.mrf.mxu3 }
 0x377   : > { %1971 = vst.msk [vmem:[%s3829_s13 + $0x18] sm:$0xf] %vm1964_vm2, %v1962_v3  ;;  %v1935_v61 = vmul.f32 %v2289_v5, %v1921_v54 }
 0x379   : > { %v1947_v41 = vadd.f32 %v2290_v10, %v1935_v61 }
 0x37b   : > { %v1955_v26 = vmax.f32 %v1947_v41, 0.0 }
 0x37d   : > { %v1963_v57 = vpack.c.bf16 %v1955_v26, %v1955_v26 }
 0x37f   : > { %1972 = vst.msk [vmem:[%s3829_s13 + $0x1c] sm:$0xf] %vm1964_vm2, %v1963_v57 }
 0x3a3   : > { %v1904_v22 = vpop.f32.mrf.mxu0 }
 0x3a4   : > { %v1928_v44 = vmul.f32 %v2289_v5, %v1904_v22 }
 0x3a6   : > { %v1940_v34 = vadd.f32 %v2290_v10, %v1928_v44 }
 0x3a8   : > { %v1948_v58 = vmax.f32 %v1940_v34, 0.0 }
 0x3aa   : > { %v1956_v14 = vpack.c.bf16 %v1948_v58, %v1948_v58 }
 0x3ab   : > { %v1906_v40 = vpop.f32.mrf.mxu0  ;;  %v1909_v46 = vpop.f32.mrf.mxu1 }
 0x3ac   : > { %1965 = vst.msk [vmem:[%s3829_s13] sm:$0xf] %vm1964_vm2, %v1956_v14  ;;  %v1929_v16 = vmul.f32 %v2289_v5, %v1906_v40  ;;  %v1930_v8 = vmul.f32 %v2289_v5, %v1909_v46 }
 0x3ae   : > { %v1941_v31 = vadd.f32 %v2290_v10, %v1929_v16  ;;  %v1942_v2 = vadd.f32 %v2290_v10, %v1930_v8 }
 0x3b0   : > { %v1949_v7 = vmax.f32 %v1941_v31, 0.0  ;;  %v1950_v51 = vmax.f32 %v1942_v2, 0.0 }
 0x3b2   : > { %v1957_v6 = vpack.c.bf16 %v1949_v7, %v1949_v7  ;;  %v1958_v12 = vpack.c.bf16 %v1950_v51, %v1950_v51 }
 0x3b3   : > { %v1911_v45 = vpop.f32.mrf.mxu1 }
 0x3b4   : > { %1966 = vst.msk [vmem:[%s3829_s13 + $0x4] sm:$0xf] %vm1964_vm2, %v1957_v6  ;;  %v1931_v56 = vmul.f32 %v2289_v5, %v1911_v45 }
 0x3b5   : > { %1967 = vst.msk [vmem:[%s3829_s13 + $0x8] sm:$0xf] %vm1964_vm2, %v1958_v12 }
 0x3b6   : > { %v1943_v23 = vadd.f32 %v2290_v10, %v1931_v56 }
 0x3b8   : > { %v1951_v63 = vmax.f32 %v1943_v23, 0.0 }
 0x3ba   : > { %v1959_v32 = vpack.c.bf16 %v1951_v63, %v1951_v63 }
 0x3bc   : > { %1968 = vst.msk [vmem:[%s3829_s13 + $0xc] sm:$0xf] %vm1964_vm2, %v1959_v32 }
 0x3bd   : > { %2318 = shalt.err (!%p2315_p10)
}
 0x3be   : > { %s4015_s17 = smov 64  }
 0x3bf   : > { %2202 = dma.vmem_to_hbm [thread:$0]  (%p2489_p3), %s1989_s16, 512, %s1991_s19, %s1974_s12, %s4015_s17, %s4015_s17, %s2388_s14  }
 0x3c0 PF: > { %p2208_p11 = scmp.ge.s32.totalorder %s2385_s28, 2  ;;  %s2005_s13 = sand.u32 1, %s2357_s21  }
 0x3c1   : > { %s2006_s29 = scalar_lea.sflag [#allocation3], %s2005_s13 }
 0x3c2   : > { %p2205_p12 = pnand %p2208_p11, %p2498_p8 }
 0x3c4   : > { %p2206_p13 = pneg %p2205_p12 }
 0x3c6   : > { %2352 = dma.done.wait (%p2206_p13), %s2006_s29, 512  }
 0x3c7   : > { %2354 = vsyncadd (%p2206_p13), %s2006_s29, 4294966784  ;;  %s19_s28 = sadd.s32 1, %s2385_s28   ;;  %s4016_s21 = smov %s2361_s22 }
 0x3c8   : > { %p16_p0 = scmp.ge.s32.totalorder %s19_s28, 18   ;;  %s4017_s22 = smov %s2365_s23 }
 0x3c9   : > { %s4018_s23 = smov %s2507_s15  ;;  %s4019_s24 = smov %s2377_s26 }
 0x3ca   : > { %s4020_s25 = smov %s2381_s27  ;;  %s4021_s26 = smov %s4024_s7 }
 0x3cb   : > { %s4022_s27 = smov %s4028_s8  ;;  %18 = sbr.rel (!%p16_p0) target bundleno = 5 (0x5), region = 85 }
 0x3d0   :  { %2012 = vsyncpa [#allocation3], 1 }
 0x3d1   :  { %2014 = vsyncpa [#allocation3 + $0x1], 1 }

</bundles_post_ra>
